<compile_context>
chip_gen: v7x
topology: tpu7x:2x2x1
jax: 0.10.0
libtpu: 0.0.40
codegen_flags: <defaults>
</compile_context>

<pallas_src>
import jax
import jax.numpy as jnp
from jax.experimental import pallas as pl
from jax.experimental.pallas import tpu as pltpu

# ---- model dims (img_height = img_width = 16, RGB) ----
IMG_H = 16
IMG_W = 16
IN_DIM = IMG_H * IMG_W * 3   # 768
H1 = 512
H2 = 256
OUT = 1
W3_ROWS = 8                  # w3^T zero-padded to 8 sublanes


def _round_up(x, m):
    return ((x + m - 1) // m) * m


def _cdiv(a, b):
    return -(-a // b)


def _leaky_relu(x, slope=0.2):
    return jnp.where(x > 0, x, slope * x)


def discriminator_kernel(x_ref, w1_ref, b1_ref, w2_ref, b2_ref,
                         w3t_ref, b3_ref, o_ref):
    # x_ref: (TB, 768) f32 tile of the flattened batch; cast to bf16 on the
    # VPU (free under the MXU) instead of in a wrapper-side HBM pass.
    x = x_ref[...].astype(jnp.bfloat16)

    # Layer 1: bf16 MXU matmul, f32 accumulate; bias + LeakyReLU in f32 (VPU).
    h1 = jnp.dot(x, w1_ref[...], preferred_element_type=jnp.float32)
    h1 = _leaky_relu(h1 + b1_ref[...])

    # Layer 2.
    h2 = jnp.dot(h1.astype(jnp.bfloat16), w2_ref[...],
                 preferred_element_type=jnp.float32)
    h2 = _leaky_relu(h2 + b2_ref[...])

    # Layer 3, transposed so the batch lies on lanes: contract the 256-dim of
    # w3^T (8, 256) and h2 (TB, 256) -> (8, TB).  Only row 0 of w3t is real
    # (rows 1..7 are zero padding for sublane alignment).  This keeps the
    # store lane-dense while writing TB floats instead of TB*128.
    logits_t = jax.lax.dot_general(
        w3t_ref[...], h2.astype(jnp.bfloat16),
        dimension_numbers=(((1,), (1,)), ((), ())),
        preferred_element_type=jnp.float32)            # (8, TB)
    logits = logits_t[0:1, :] + b3_ref[...]            # (1, TB) + (1, 1)
    o_ref[...] = jax.nn.sigmoid(logits).astype(o_ref.dtype)


def prepare_params(params):
    """One-time weight prep (hoisted out of the forward path).

    params: (w1 (768,512), b1 (1,512), w2 (512,256), b2 (1,256),
             w3 (256,1),  b3 (1,1)) with weights stored (in, out).
    """
    w1, b1, w2, b2, w3, b3 = params
    w1c = w1.astype(jnp.bfloat16)
    w2c = w2.astype(jnp.bfloat16)
    # w3 (256, 1) -> transposed row (1, 256), zero-padded to 8 sublanes.
    w3t = jnp.pad(w3.T, ((0, W3_ROWS - OUT), (0, 0))).astype(jnp.bfloat16)
    b1c = b1.astype(jnp.float32).reshape(1, H1)
    b2c = b2.astype(jnp.float32).reshape(1, H2)
    b3c = b3.astype(jnp.float32).reshape(1, 1)
    return (w1c, b1c, w2c, b2c, w3t, b3c)


def discriminator_forward(x_nchw, prepared_params, *, block_b=2048):
    """x_nchw: (B, 3, H, W) float32 -> (B, 1) float32 probabilities."""
    w1c, b1c, w2c, b2c, w3t, b3c = prepared_params
    B = x_nchw.shape[0]
    # nn.Flatten on NCHW == row-major reshape.  Input stays f32 (cast is done
    # on the VPU inside the kernel).
    x_flat = x_nchw.reshape(B, -1).astype(jnp.float32)

    # --- batch tiling -------------------------------------------------------
    # Split B as evenly as possible into n_tiles tiles of tb rows, tb a
    # multiple of 128 (lane-dense transposed output, sublane-aligned input).
    # Force >= 2 tiles for mid-size batches so the "parallel" grid axis can
    # shard across v7x's two TensorCores.
    n_tiles = max(1, _cdiv(B, block_b))
    if n_tiles == 1 and B >= 256:
        n_tiles = 2
    tb = _round_up(_cdiv(B, n_tiles), 128)
    b_pad = n_tiles * tb
    if b_pad != B:
        x_flat = jnp.pad(x_flat, ((0, b_pad - B), (0, 0)))

    # --- scheduler hints ----------------------------------------------------
    w_bytes = ((w1c.size + w2c.size + w3t.size) * 2
               + (b1c.size + b2c.size + b3c.size) * 4)
    cost = pl.CostEstimate(
        flops=2 * b_pad * (IN_DIM * H1 + H1 * H2 + H2 * W3_ROWS),
        transcendentals=b_pad,
        bytes_accessed=b_pad * IN_DIM * 4 + w_bytes + b_pad * 4)

    # VMEM: double-buffered f32 input tile + output row, weights (default
    # double-buffer), and in-kernel temporaries, with slack.
    vmem_bytes = (
        2 * tb * IN_DIM * 4
        + 2 * tb * 4
        + 2 * w_bytes
        + tb * (IN_DIM * 2 + H1 * 6 + H2 * 6 + W3_ROWS * 4)
    )
    vmem_limit = max(32 * 1024 * 1024,
                     min(int(1.25 * vmem_bytes), 64 * 1024 * 1024))

    out = pl.pallas_call(
        discriminator_kernel,
        out_shape=jax.ShapeDtypeStruct((1, b_pad), jnp.float32),
        grid=(n_tiles,),
        in_specs=[
            # Batch-tiled f32 input: double-buffered DMA across grid steps.
            pl.BlockSpec((tb, IN_DIM), lambda i: (i, 0)),
            # Weights/biases: constant index maps -> VMEM-resident.
            pl.BlockSpec((IN_DIM, H1), lambda i: (0, 0)),
            pl.BlockSpec((1, H1), lambda i: (0, 0)),
            pl.BlockSpec((H1, H2), lambda i: (0, 0)),
            pl.BlockSpec((1, H2), lambda i: (0, 0)),
            pl.BlockSpec((W3_ROWS, H2), lambda i: (0, 0)),
            pl.BlockSpec((1, 1), lambda i: (0, 0)),
        ],
        # Transposed, lane-dense output row: batch on lanes.
        out_specs=pl.BlockSpec((1, tb), lambda i: (0, i)),
        compiler_params=pltpu.CompilerParams(
            dimension_semantics=("parallel",),
            vmem_limit_bytes=vmem_limit),
        cost_estimate=cost,
    )(x_flat, w1c, b1c, w2c, b2c, w3t, b3c)

    # (1, b_pad) row of probabilities -> (B, 1), dropping batch padding.
    return out[0, :B].reshape(B, OUT)


def init_params(key):
    """Deterministic init mimicking PyTorch Linear default U(-1/sqrt(in), 1/sqrt(in))."""
    ks = jax.random.split(key, 6)

    def lin(kw, kb, fan_in, fan_out):
        bound = 1.0 / jnp.sqrt(jnp.float32(fan_in))
        w = jax.random.uniform(kw, (fan_in, fan_out), jnp.float32, -bound, bound)
        b = jax.random.uniform(kb, (1, fan_out), jnp.float32, -bound, bound)
        return w, b

    w1, b1 = lin(ks[0], ks[1], IN_DIM, H1)
    w2, b2 = lin(ks[2], ks[3], H1, H2)
    w3, b3 = lin(ks[4], ks[5], H2, OUT)
    return (w1, b1, w2, b2, w3, b3)


if __name__ == "__main__":
    key = jax.random.PRNGKey(0)
    k_x, k_p = jax.random.split(key)

    B = 2
    x = jax.random.normal(k_x, (B, 3, IMG_H, IMG_W), jnp.float32)  # NCHW
    params = init_params(k_p)
    prepped = prepare_params(params)                 # hoisted weight prep

    out = discriminator_forward(x, prepped)
    out = jax.block_until_ready(out)

    assert out.shape == (B, OUT), out.shape
    assert bool(jnp.all((out >= 0.0) & (out <= 1.0)))

    w1, b1, w2, b2, w3, b3 = params
    xf32 = x.reshape(B, -1)

    # Reference matching the kernel's precision path (bf16 operands,
    # f32 accumulation / f32 activations).
    q = lambda a: a.astype(jnp.bfloat16).astype(jnp.float32)
    h1 = _leaky_relu(q(xf32) @ q(w1) + b1)
    h2 = _leaky_relu(q(h1) @ q(w2) + b2)
    ref_bf16 = jax.nn.sigmoid(q(h2) @ q(w3) + b3)
    assert bool(jnp.allclose(out, ref_bf16, atol=1e-3, rtol=1e-3)), (out, ref_bf16)

    # Sanity vs. the pure-f32 PyTorch-equivalent reference (looser tolerance
    # because the kernel uses bf16 MXU operands).
    h1f = _leaky_relu(xf32 @ w1 + b1)
    h2f = _leaky_relu(h1f @ w2 + b2)
    ref_f32 = jax.nn.sigmoid(h2f @ w3 + b3)
    assert bool(jnp.allclose(out, ref_f32, atol=5e-2)), (out, ref_f32)

    print("KERNEL_OK")
</pallas_src>

<mosaic_0001>
module attributes {stable_mosaic.version = 11 : i64} {
  func.func @discriminator_kernel(%arg0: i32, %arg1: memref<128x768xf32, #tpu.memory_space<vmem>>, %arg2: memref<768x512xbf16, #tpu.memory_space<vmem>>, %arg3: memref<1x512xf32, #tpu.memory_space<vmem>>, %arg4: memref<512x256xbf16, #tpu.memory_space<vmem>>, %arg5: memref<1x256xf32, #tpu.memory_space<vmem>>, %arg6: memref<8x256xbf16, #tpu.memory_space<vmem>>, %arg7: memref<1x1xf32, #tpu.memory_space<vmem>>, %arg8: memref<1x128xf32, #tpu.memory_space<vmem>>) attributes {dimension_semantics = [#tpu.dimension_semantics<parallel>], iteration_bounds = array<i64: 1>, scalar_prefetch = 0 : i64, scratch_operands = 0 : i64, tpu.core_type = #tpu.core_type<tc>, window_params = [{transform_indices = @transform_0, window_bounds = array<i64: 128, 768>}, {pipeline_mode = #tpu.pipeline_mode<synchronous>, transform_indices = @transform_1, window_bounds = array<i64: 768, 512>}, {pipeline_mode = #tpu.pipeline_mode<synchronous>, transform_indices = @transform_2, window_bounds = array<i64: 1, 512>}, {pipeline_mode = #tpu.pipeline_mode<synchronous>, transform_indices = @transform_3, window_bounds = array<i64: 512, 256>}, {pipeline_mode = #tpu.pipeline_mode<synchronous>, transform_indices = @transform_4, window_bounds = array<i64: 1, 256>}, {pipeline_mode = #tpu.pipeline_mode<synchronous>, transform_indices = @transform_5, window_bounds = array<i64: 8, 256>}, {pipeline_mode = #tpu.pipeline_mode<synchronous>, transform_indices = @transform_6, window_bounds = array<i64: 1, 1>}, {transform_indices = @transform_7, window_bounds = array<i64: 1, 128>}]} {
    %c0 = arith.constant 0 : index
    %c0_0 = arith.constant 0 : index
    %0 = vector.load %arg1[%c0, %c0_0] : memref<128x768xf32, #tpu.memory_space<vmem>>, vector<128x768xf32>
    %1 = arith.truncf %0 : vector<128x768xf32> to vector<128x768xbf16>
    %c0_1 = arith.constant 0 : index
    %c0_2 = arith.constant 0 : index
    %2 = vector.load %arg2[%c0_1, %c0_2] : memref<768x512xbf16, #tpu.memory_space<vmem>>, vector<768x512xbf16>
    %cst = arith.constant dense<0.000000e+00> : vector<128x512xf32>
    %3 = tpu.matmul %1, %2, %cst {dimension_numbers = #tpu.dot_dimension_numbers<[1], [0], [0], [1], [0, 0, 1, 1], [], []>} : vector<128x768xbf16>, vector<768x512xbf16>, vector<128x512xf32> -> vector<128x512xf32>
    %c0_3 = arith.constant 0 : index
    %c0_4 = arith.constant 0 : index
    %4 = vector.load %arg3[%c0_3, %c0_4] : memref<1x512xf32, #tpu.memory_space<vmem>>, vector<1x512xf32>
    %5 = vector.broadcast %4 : vector<1x512xf32> to vector<128x512xf32>
    %6 = arith.addf %3, %5 : vector<128x512xf32>
    %cst_5 = arith.constant 0.000000e+00 : f32
    %7 = vector.broadcast %cst_5 : f32 to vector<128x512xf32>
    %8 = arith.cmpf ogt, %6, %7 : vector<128x512xf32>
    %cst_6 = arith.constant 2.000000e-01 : f32
    %9 = vector.broadcast %cst_6 : f32 to vector<128x512xf32>
    %10 = arith.mulf %9, %6 : vector<128x512xf32>
    %11 = arith.select %8, %6, %10 : vector<128x512xi1>, vector<128x512xf32>
    %12 = arith.truncf %11 : vector<128x512xf32> to vector<128x512xbf16>
    %c0_7 = arith.constant 0 : index
    %c0_8 = arith.constant 0 : index
    %13 = vector.load %arg4[%c0_7, %c0_8] : memref<512x256xbf16, #tpu.memory_space<vmem>>, vector<512x256xbf16>
    %cst_9 = arith.constant dense<0.000000e+00> : vector<128x256xf32>
    %14 = tpu.matmul %12, %13, %cst_9 {dimension_numbers = #tpu.dot_dimension_numbers<[1], [0], [0], [1], [0, 0, 1, 1], [], []>} : vector<128x512xbf16>, vector<512x256xbf16>, vector<128x256xf32> -> vector<128x256xf32>
    %c0_10 = arith.constant 0 : index
    %c0_11 = arith.constant 0 : index
    %15 = vector.load %arg5[%c0_10, %c0_11] : memref<1x256xf32, #tpu.memory_space<vmem>>, vector<1x256xf32>
    %16 = vector.broadcast %15 : vector<1x256xf32> to vector<128x256xf32>
    %17 = arith.addf %14, %16 : vector<128x256xf32>
    %cst_12 = arith.constant 0.000000e+00 : f32
    %18 = vector.broadcast %cst_12 : f32 to vector<128x256xf32>
    %19 = arith.cmpf ogt, %17, %18 : vector<128x256xf32>
    %cst_13 = arith.constant 2.000000e-01 : f32
    %20 = vector.broadcast %cst_13 : f32 to vector<128x256xf32>
    %21 = arith.mulf %20, %17 : vector<128x256xf32>
    %22 = arith.select %19, %17, %21 : vector<128x256xi1>, vector<128x256xf32>
    %c0_14 = arith.constant 0 : index
    %c0_15 = arith.constant 0 : index
    %23 = vector.load %arg6[%c0_14, %c0_15] : memref<8x256xbf16, #tpu.memory_space<vmem>>, vector<8x256xbf16>
    %24 = arith.truncf %22 : vector<128x256xf32> to vector<128x256xbf16>
    %cst_16 = arith.constant dense<0.000000e+00> : vector<8x128xf32>
    %25 = tpu.matmul %23, %24, %cst_16 {dimension_numbers = #tpu.dot_dimension_numbers<[1], [1], [0], [0], [0, 0, 1, 0], [], []>} : vector<8x256xbf16>, vector<128x256xbf16>, vector<8x128xf32> -> vector<8x128xf32>
    %26 = vector.extract_strided_slice %25 {offsets = [0, 0], sizes = [1, 128], strides = [1, 1]} : vector<8x128xf32> to vector<1x128xf32>
    %c0_17 = arith.constant 0 : index
    %c0_18 = arith.constant 0 : index
    %27 = vector.load %arg7[%c0_17, %c0_18] : memref<1x1xf32, #tpu.memory_space<vmem>>, vector<1x1xf32>
    %28 = vector.broadcast %27 : vector<1x1xf32> to vector<1x128xf32>
    %29 = arith.addf %26, %28 : vector<1x128xf32>
    %30 = arith.negf %29 : vector<1x128xf32>
    %31 = math.exp %30 : vector<1x128xf32>
    %cst_19 = arith.constant 1.000000e+00 : f32
    %32 = vector.broadcast %cst_19 : f32 to vector<1x128xf32>
    %33 = arith.addf %32, %31 : vector<1x128xf32>
    %34 = arith.divf %32, %33 : vector<1x128xf32>
    %c0_20 = arith.constant 0 : index
    %c0_21 = arith.constant 0 : index
    %35 = vector.load %arg8[%c0_20, %c0_21] : memref<1x128xf32, #tpu.memory_space<vmem>>, vector<1x128xf32>
    tpu.vector_store %arg8[%c0_20, %c0_21], %34 {strides = array<i32>} : memref<1x128xf32, #tpu.memory_space<vmem>>, vector<1x128xf32>,
    return
  }
  func.func @transform_0(%arg0: i32) -> (i32, i32) {
    %c0_i32 = arith.constant 0 : i32
    %c0_i32_0 = arith.constant 0 : i32
    return %arg0, %c0_i32 : i32, i32
  }
  func.func @transform_1(%arg0: i32) -> (i32, i32) {
    %c0_i32 = arith.constant 0 : i32
    %c0_i32_0 = arith.constant 0 : i32
    %c0_i32_1 = arith.constant 0 : i32
    return %c0_i32, %c0_i32_0 : i32, i32
  }
  func.func @transform_2(%arg0: i32) -> (i32, i32) {
    %c0_i32 = arith.constant 0 : i32
    %c0_i32_0 = arith.constant 0 : i32
    %c0_i32_1 = arith.constant 0 : i32
    return %c0_i32, %c0_i32_0 : i32, i32
  }
  func.func @transform_3(%arg0: i32) -> (i32, i32) {
    %c0_i32 = arith.constant 0 : i32
    %c0_i32_0 = arith.constant 0 : i32
    %c0_i32_1 = arith.constant 0 : i32
    return %c0_i32, %c0_i32_0 : i32, i32
  }
  func.func @transform_4(%arg0: i32) -> (i32, i32) {
    %c0_i32 = arith.constant 0 : i32
    %c0_i32_0 = arith.constant 0 : i32
    %c0_i32_1 = arith.constant 0 : i32
    return %c0_i32, %c0_i32_0 : i32, i32
  }
  func.func @transform_5(%arg0: i32) -> (i32, i32) {
    %c0_i32 = arith.constant 0 : i32
    %c0_i32_0 = arith.constant 0 : i32
    %c0_i32_1 = arith.constant 0 : i32
    return %c0_i32, %c0_i32_0 : i32, i32
  }
  func.func @transform_6(%arg0: i32) -> (i32, i32) {
    %c0_i32 = arith.constant 0 : i32
    %c0_i32_0 = arith.constant 0 : i32
    %c0_i32_1 = arith.constant 0 : i32
    return %c0_i32, %c0_i32_0 : i32, i32
  }
  func.func @transform_7(%arg0: i32) -> (i32, i32) {
    %c0_i32 = arith.constant 0 : i32
    %c0_i32_0 = arith.constant 0 : i32
    return %c0_i32, %arg0 : i32, i32
  }
}

</mosaic_0001>

<bundles_post_ra>
// kernel: tpu_custom_call.1
= control target key start
LH: loop header
LB: loop body
LE: loop exit
PB: predicated region body
PF: predicated region fallthrough
CT: control target
= control target key end

     0   :  { %s4637_s0 = inlined_call_operand.hbm [shape: f32[128,768], index: 0, kind: input, shape index: {}]   ;;  %s4638_s1 = inlined_call_operand.hbm [shape: bf16[768,512], index: 1, kind: input, shape index: {}]   ;;  %s4639_s2 = inlined_call_operand.vmem [shape: f32[1,512], index: 2, kind: input, shape index: {}]   ;;  %s4640_s3 = inlined_call_operand.hbm [shape: bf16[512,256], index: 3, kind: input, shape index: {}]   ;;  %s4641_s4 = inlined_call_operand.vmem [shape: f32[1,256], index: 4, kind: input, shape index: {}]   ;;  %s4642_s5 = inlined_call_operand.vmem [shape: bf16[8,256], index: 5, kind: input, shape index: {}]   ;;  %s4643_s6 = inlined_call_operand.<no memory space> [shape: f32[1,1], index: 6, kind: input, shape index: {}]   ;;  %s4644_s7 = inlined_call_operand.hbm [shape: f32[1,128], index: 7, kind: output, shape index: {}]  }
   0x1   :  { %v12_v0 = vstv %s4643_s6 }
   0x2   :  { %13 = vst [vmem:[#allocation2] sm:$0x1] %v12_v0 }
   0x3   :  { %14 = vsyncpa [#allocation4], 0 }
   0x4   :  { %15 = vsyncpa [#allocation7], 0 }
   0x5   :  { %16 = vsyncpa [#allocation5], 0  ;;  %s4118_s26 = smov [#allocation6]   ;;  %s4024_s30 = scalar_lea.hbm %s4638_s1, 24576 }
   0x6   :  { %s34_s27 = sshll.u32 %s4118_s26, 4  ;;  %p4025_p0 = scmp.ne.s32.totalorder %s4638_s1, %s4024_s30  ;;  %s35_s27 = int_to_ptr.vmem [resolvable:$true] %s34_s27 }
   0x7   :  { %p4028_p1 = scmp.lt.u32.totalorder %s4024_s30, %s4638_s1 }
   0x9   :  { %p4030_p2 = pnand %p4028_p1, %p4025_p0 }
   0xb   :  { %4033 = shalt.err (!%p4030_p2)
}
   0xc   :  { %s4034_s6 = scalar_lea.vmem %s35_s27, 24576  ;;  %p4039_p4 = scmp.lt.s32.totalorder %s35_s27, %s35_s27 }
   0xd   :  { %p4035_p3 = scmp.ne.s32.totalorder %s35_s27, %s4034_s6  ;;  %p4040_p5 = scmp.lt.s32.totalorder %s4034_s6, %s4034_s6 }
   0xf   :  { %p4041_p6 = por %p4040_p5, %p4039_p4 }
  0x11   :  { %p4042_p7 = pnand %p4041_p6, %p4035_p3 }
  0x13   :  { %4045 = shalt.err (!%p4042_p7)
}
  0x14   :  { %s4119_s12 = smov 256   ;;  %s4120_s13 = smov 16  }
  0x15   :  { %40 = dma.hbm_to_vmem [thread:$0]  %s4638_s1, 24576, %s35_s27, [#allocation7], %s4119_s12, %s4119_s12, %s4120_s13  }
  0x16   :  { %s4121_s16 = smov [#allocation3]   ;;  %s4046_s20 = scalar_lea.hbm %s4637_s0, 12288 }
  0x17   :  { %s22_s17 = sshll.u32 %s4121_s16, 4  ;;  %p4047_p8 = scmp.ne.s32.totalorder %s4637_s0, %s4046_s20  ;;  %s23_s17 = int_to_ptr.vmem [resolvable:$true] %s22_s17 }
  0x18   :  { %p4050_p9 = scmp.lt.u32.totalorder %s4046_s20, %s4637_s0 }
  0x1a   :  { %p4052_p10 = pnand %p4050_p9, %p4047_p8 }
  0x1c   :  { %4055 = shalt.err (!%p4052_p10)
}
  0x1d   :  { %s4056_s25 = scalar_lea.vmem %s23_s17, 12288  ;;  %p4061_p12 = scmp.lt.s32.totalorder %s23_s17, %s23_s17 }
  0x1e   :  { %p4057_p11 = scmp.ne.s32.totalorder %s23_s17, %s4056_s25  ;;  %p4062_p13 = scmp.lt.s32.totalorder %s4056_s25, %s4056_s25 }
  0x20   :  { %p4063_p0 = por %p4062_p13, %p4061_p12 }
  0x22   :  { %p4064_p1 = pnand %p4063_p0, %p4057_p11 }
  0x24   :  { %4067 = shalt.err (!%p4064_p1)
}
  0x25   :  { %s4122_s1 = smov 768   ;;  %s4123_s26 = smov 48  }
  0x26   :  { %28 = dma.hbm_to_vmem [thread:$0]  %s4637_s0, 12288, %s23_s17, [#allocation4], %s4122_s1, %s4122_s1, %s4123_s26  }
  0x27   :  { %s4124_s29 = smov [#allocation8]   ;;  %s4068_s10 = scalar_lea.hbm %s4640_s3, 8192 }
  0x28   :  { %s48_s30 = sshll.u32 %s4124_s29, 4  ;;  %p4069_p2 = scmp.ne.s32.totalorder %s4640_s3, %s4068_s10  ;;  %s49_s30 = int_to_ptr.vmem [resolvable:$true] %s48_s30 }
  0x29   :  { %p4072_p3 = scmp.lt.u32.totalorder %s4068_s10, %s4640_s3 }
  0x2b   :  { %p4074_p4 = pnand %p4072_p3, %p4069_p2 }
  0x2d   :  { %4077 = shalt.err (!%p4074_p4)
}
  0x2e   :  { %s4078_s14 = scalar_lea.vmem %s49_s30, 8192  ;;  %p4083_p6 = scmp.lt.s32.totalorder %s49_s30, %s49_s30 }
  0x2f   :  { %p4079_p5 = scmp.ne.s32.totalorder %s49_s30, %s4078_s14  ;;  %p4084_p7 = scmp.lt.s32.totalorder %s4078_s14, %s4078_s14 }
  0x31   :  { %p4085_p8 = por %p4084_p7, %p4083_p6 }
  0x33   :  { %p4086_p9 = pnand %p4085_p8, %p4079_p5 }
  0x35   :  { %4089 = shalt.err (!%p4086_p9)
}
  0x36   :  { %s4125_s0 = smov 128   ;;  %s4126_s15 = smov 8  }
  0x37   :  { %54 = dma.hbm_to_vmem [thread:$0]  %s4640_s3, 8192, %s49_s30, [#allocation7], %s4125_s0, %s4125_s0, %s4126_s15  }
  0x38   :  { %4112 = dma.done.wait [#allocation4], 12288  }
  0x39   :  { %4113 = vsyncadd [#allocation4], 4294955008 }
  0x3a   :  { %4114 = dma.done.wait [#allocation7], 32768  }
  0x3b   :  { %4115 = vsyncadd [#allocation7], 4294934528  ;;  %v3634_v1 = vld [vmem:[#allocation6 + $0x4] ss:$16 sps:$4 sm:$0xff]   ;;  %v3638_v3 = vld [vmem:[#allocation6] ss:$16 sps:$4 sm:$0xff]  }
  0x3c   :  { %v3636_v2 = vld [vmem:[#allocation6 + $0x204] ss:$16 sps:$4 sm:$0xff]   ;;  %1389 = vmatprep.subr.bf16.mxu1 %v3634_v1  ;;  %v3639_v4 = vld [vmem:[#allocation6 + $0x200] ss:$16 sps:$4 sm:$0xff]   ;;  %v72_v47 = vld [vmem:[#allocation3 + $0x8] sm:$0xff] }
  0x3d   :  { %1502 = vmatprep.subr.bf16.mxu0 %v3636_v2  ;;  %v3640_v5 = vld [vmem:[#allocation6 + $0x24] ss:$16 sps:$4 sm:$0xff]   ;;  %1390 = vmatpush1.bf16.msra.mxu1 %v3638_v3  ;;  %v3644_v7 = vld [vmem:[#allocation6 + $0x20] ss:$16 sps:$4 sm:$0xff]   ;;  %v78_v48 = vld [vmem:[#allocation3 + $0x38] sm:$0xff] }
  0x3e   :  { %1503 = vmatpush1.bf16.msra.mxu0 %v3639_v4  ;;  %v3642_v6 = vld [vmem:[#allocation6 + $0x224] ss:$16 sps:$4 sm:$0xff]   ;;  %1391 = vmatprep.subr.bf16.mxu1 %v3640_v5  ;;  %v3645_v8 = vld [vmem:[#allocation6 + $0x220] ss:$16 sps:$4 sm:$0xff]   ;;  %v74_v49 = vld [vmem:[#allocation3 + $0x18] sm:$0xff]  ;;  %v4208_v54 = vpack.c.bf16 %v78_v48, %v72_v47 }
  0x3f   :  { %1504 = vmatprep.subr.bf16.mxu0 %v3642_v6  ;;  %v3646_v9 = vld [vmem:[#allocation6 + $0x44] ss:$16 sps:$4 sm:$0xff]   ;;  %v3650_v11 = vld [vmem:[#allocation6 + $0x40] ss:$16 sps:$4 sm:$0xff]   ;;  %v80_v50 = vld [vmem:[#allocation3 + $0x48] sm:$0xff] }
  0x40   :  { %v3648_v10 = vld [vmem:[#allocation6 + $0x244] ss:$16 sps:$4 sm:$0xff]   ;;  %v3651_v12 = vld [vmem:[#allocation6 + $0x240] ss:$16 sps:$4 sm:$0xff]   ;;  %v4210_v55 = vpack.c.bf16 %v80_v50, %v74_v49  ;;  %1421 = vmatprep.mubr.bf16.mxu1 %v4208_v54 }
  0x41   :  { %1392 = vmatpush1.bf16.msra.mxu1 %v3644_v7  ;;  %v3652_v13 = vld [vmem:[#allocation6 + $0x64] ss:$16 sps:$4 sm:$0xff]   ;;  %v3656_v15 = vld [vmem:[#allocation6 + $0x60] ss:$16 sps:$4 sm:$0xff]  }
  0x42   :  { %1505 = vmatpush1.bf16.msra.mxu0 %v3645_v8  ;;  %1393 = vmatprep.subr.bf16.mxu1 %v3646_v9  ;;  %v3654_v14 = vld [vmem:[#allocation6 + $0x264] ss:$16 sps:$4 sm:$0xff]   ;;  %v3657_v16 = vld [vmem:[#allocation6 + $0x260] ss:$16 sps:$4 sm:$0xff]  }
  0x43   :  { %1506 = vmatprep.subr.bf16.mxu0 %v3648_v10  ;;  %v3658_v17 = vld [vmem:[#allocation6 + $0x84] ss:$16 sps:$4 sm:$0xff]   ;;  %v3662_v19 = vld [vmem:[#allocation6 + $0x80] ss:$16 sps:$4 sm:$0xff]   ;;  %1534 = vmatprep.mubr.bf16.mxu0 %v4210_v55 }
  0x44   :  { %v3660_v18 = vld [vmem:[#allocation6 + $0x284] ss:$16 sps:$4 sm:$0xff]   ;;  %v3663_v20 = vld [vmem:[#allocation6 + $0x280] ss:$16 sps:$4 sm:$0xff]  }
  0x45   :  { %1394 = vmatpush1.bf16.msra.mxu1 %v3650_v11  ;;  %v3664_v21 = vld [vmem:[#allocation6 + $0xa4] ss:$16 sps:$4 sm:$0xff]   ;;  %v3668_v23 = vld [vmem:[#allocation6 + $0xa0] ss:$16 sps:$4 sm:$0xff]  }
  0x46   :  { %1507 = vmatpush1.bf16.msra.mxu0 %v3651_v12  ;;  %1395 = vmatprep.subr.bf16.mxu1 %v3652_v13  ;;  %v3666_v22 = vld [vmem:[#allocation6 + $0x2a4] ss:$16 sps:$4 sm:$0xff]   ;;  %v3669_v24 = vld [vmem:[#allocation6 + $0x2a0] ss:$16 sps:$4 sm:$0xff]   ;;  %v3735_v12 = vld [vmem:[#allocation6 + $0xc] ss:$16 sps:$4 sm:$0xff]  }
  0x47   :  { %1508 = vmatprep.subr.bf16.mxu0 %v3654_v14  ;;  %v3670_v25 = vld [vmem:[#allocation6 + $0xc4] ss:$16 sps:$4 sm:$0xff]   ;;  %v3674_v27 = vld [vmem:[#allocation6 + $0xc0] ss:$16 sps:$4 sm:$0xff]   ;;  %v3733_v14 = vld [vmem:[#allocation6 + $0x8] ss:$16 sps:$4 sm:$0xff]  }
  0x48   :  { %v3672_v26 = vld [vmem:[#allocation6 + $0x2c4] ss:$16 sps:$4 sm:$0xff]   ;;  %v3675_v28 = vld [vmem:[#allocation6 + $0x2c0] ss:$16 sps:$4 sm:$0xff]  }
  0x49   :  { %1396 = vmatpush1.bf16.msra.mxu1 %v3656_v15  ;;  %v3676_v29 = vld [vmem:[#allocation6 + $0xe4] ss:$16 sps:$4 sm:$0xff]   ;;  %v3680_v31 = vld [vmem:[#allocation6 + $0xe0] ss:$16 sps:$4 sm:$0xff]   ;;  %v84_v15 = vld [vmem:[#allocation3 + $0x68] sm:$0xff] }
  0x4a   :  { %1509 = vmatpush1.bf16.msra.mxu0 %v3657_v16  ;;  %1397 = vmatprep.subr.bf16.mxu1 %v3658_v17  ;;  %v3678_v30 = vld [vmem:[#allocation6 + $0x2e4] ss:$16 sps:$4 sm:$0xff]   ;;  %v3681_v32 = vld [vmem:[#allocation6 + $0x2e0] ss:$16 sps:$4 sm:$0xff]   ;;  %v90_v16 = vld [vmem:[#allocation3 + $0x98] sm:$0xff] }
  0x4b   :  { %1510 = vmatprep.subr.bf16.mxu0 %v3660_v18  ;;  %v3682_v33 = vld [vmem:[#allocation6 + $0x104] ss:$16 sps:$4 sm:$0xff]   ;;  %v3686_v35 = vld [vmem:[#allocation6 + $0x100] ss:$16 sps:$4 sm:$0xff]  }
  0x4c   :  { %v3684_v34 = vld [vmem:[#allocation6 + $0x304] ss:$16 sps:$4 sm:$0xff]   ;;  %v3687_v36 = vld [vmem:[#allocation6 + $0x300] ss:$16 sps:$4 sm:$0xff]  }
  0x4d   :  { %1398 = vmatpush1.bf16.msra.mxu1 %v3662_v19  ;;  %v3688_v37 = vld [vmem:[#allocation6 + $0x124] ss:$16 sps:$4 sm:$0xff]   ;;  %v3692_v39 = vld [vmem:[#allocation6 + $0x120] ss:$16 sps:$4 sm:$0xff]   ;;  %v86_v19 = vld [vmem:[#allocation3 + $0x78] sm:$0xff] }
  0x4e   :  { %1511 = vmatpush1.bf16.msra.mxu0 %v3663_v20  ;;  %1399 = vmatprep.subr.bf16.mxu1 %v3664_v21  ;;  %v3690_v38 = vld [vmem:[#allocation6 + $0x324] ss:$16 sps:$4 sm:$0xff]   ;;  %v3693_v40 = vld [vmem:[#allocation6 + $0x320] ss:$16 sps:$4 sm:$0xff]   ;;  %v92_v20 = vld [vmem:[#allocation3 + $0xa8] sm:$0xff] }
  0x4f   :  { %1512 = vmatprep.subr.bf16.mxu0 %v3666_v22  ;;  %v3694_v41 = vld [vmem:[#allocation6 + $0x144] ss:$16 sps:$4 sm:$0xff]   ;;  %v3698_v43 = vld [vmem:[#allocation6 + $0x140] ss:$16 sps:$4 sm:$0xff]   ;;  %v3741_v22 = vld [vmem:[#allocation6 + $0x2c] ss:$16 sps:$4 sm:$0xff]  }
  0x50   :  { %v3696_v42 = vld [vmem:[#allocation6 + $0x344] ss:$16 sps:$4 sm:$0xff]   ;;  %v3699_v44 = vld [vmem:[#allocation6 + $0x340] ss:$16 sps:$4 sm:$0xff]  }
  0x51   :  { %1400 = vmatpush1.bf16.msra.mxu1 %v3668_v23  ;;  %v3700_v45 = vld [vmem:[#allocation6 + $0x164] ss:$16 sps:$4 sm:$0xff]   ;;  %v3704_v51 = vld [vmem:[#allocation6 + $0x160] ss:$16 sps:$4 sm:$0xff]  }
  0x52   :  { %1513 = vmatpush1.bf16.msra.mxu0 %v3669_v24  ;;  %1401 = vmatprep.subr.bf16.mxu1 %v3670_v25  ;;  %v3702_v46 = vld [vmem:[#allocation6 + $0x364] ss:$16 sps:$4 sm:$0xff]   ;;  %v3705_v52 = vld [vmem:[#allocation6 + $0x360] ss:$16 sps:$4 sm:$0xff]   ;;  %v4218_v24 = vpack.c.bf16 %v90_v16, %v84_v15  ;;  %v4220_v25 = vpack.c.bf16 %v92_v20, %v86_v19  ;;  %v122_v19 = vld [vmem:[#allocation3 + $0x198] sm:$0xff] }
  0x53   :  { %1514 = vmatprep.subr.bf16.mxu0 %v3672_v26  ;;  %v3706_v53 = vld [vmem:[#allocation6 + $0x184] ss:$16 sps:$4 sm:$0xff]   ;;  %v3710_v57 = vld [vmem:[#allocation6 + $0x180] ss:$16 sps:$4 sm:$0xff]   ;;  %v3739_v26 = vld [vmem:[#allocation6 + $0x28] ss:$16 sps:$4 sm:$0xff]  }
  0x54   :  { %v3708_v56 = vld [vmem:[#allocation6 + $0x384] ss:$16 sps:$4 sm:$0xff]   ;;  %v3711_v58 = vld [vmem:[#allocation6 + $0x380] ss:$16 sps:$4 sm:$0xff]   ;;  %v128_v20 = vld [vmem:[#allocation3 + $0x1c8] sm:$0xff] }
  0x55   :  { %1402 = vmatpush1.bf16.msra.mxu1 %v3674_v27  ;;  %v3712_v59 = vld [vmem:[#allocation6 + $0x1a4] ss:$16 sps:$4 sm:$0xff]   ;;  %v3716_v61 = vld [vmem:[#allocation6 + $0x1a0] ss:$16 sps:$4 sm:$0xff]  }
  0x56   :  { %1515 = vmatpush1.bf16.msra.mxu0 %v3675_v28  ;;  %1403 = vmatprep.subr.bf16.mxu1 %v3676_v29  ;;  %v3714_v60 = vld [vmem:[#allocation6 + $0x3a4] ss:$16 sps:$4 sm:$0xff]   ;;  %v3717_v62 = vld [vmem:[#allocation6 + $0x3a0] ss:$16 sps:$4 sm:$0xff]  }
  0x57   :  { %1516 = vmatprep.subr.bf16.mxu0 %v3678_v30  ;;  %v3718_v63 = vld [vmem:[#allocation6 + $0x1c4] ss:$16 sps:$4 sm:$0xff]   ;;  %v3722_v1 = vld [vmem:[#allocation6 + $0x1c0] ss:$16 sps:$4 sm:$0xff]  }
  0x58   :  { %v3720_v0 = vld [vmem:[#allocation6 + $0x3c4] ss:$16 sps:$4 sm:$0xff]   ;;  %v3723_v2 = vld [vmem:[#allocation6 + $0x3c0] ss:$16 sps:$4 sm:$0xff]  }
  0x59   :  { %1404 = vmatpush1.bf16.msra.mxu1 %v3680_v31  ;;  %v3724_v3 = vld [vmem:[#allocation6 + $0x1e4] ss:$16 sps:$4 sm:$0xff]   ;;  %v3728_v5 = vld [vmem:[#allocation6 + $0x1e0] ss:$16 sps:$4 sm:$0xff]  }
  0x5a   :  { %1517 = vmatpush1.bf16.msra.mxu0 %v3681_v32  ;;  %1405 = vmatprep.subr.bf16.mxu1 %v3682_v33  ;;  %v3726_v4 = vld [vmem:[#allocation6 + $0x3e4] ss:$16 sps:$4 sm:$0xff]   ;;  %v3729_v6 = vld [vmem:[#allocation6 + $0x3e0] ss:$16 sps:$4 sm:$0xff]   ;;  %v3747_v32 = vld [vmem:[#allocation6 + $0x4c] ss:$16 sps:$4 sm:$0xff]  }
  0x5b   :  { %1518 = vmatprep.subr.bf16.mxu0 %v3684_v34  ;;  %v71_v7 = vld [vmem:[#allocation3] sm:$0xff]  ;;  %v77_v8 = vld [vmem:[#allocation3 + $0x30] sm:$0xff]  ;;  %v3745_v34 = vld [vmem:[#allocation6 + $0x48] ss:$16 sps:$4 sm:$0xff]  }
  0x5c   :  { %v73_v9 = vld [vmem:[#allocation3 + $0x10] sm:$0xff]  ;;  %v79_v10 = vld [vmem:[#allocation3 + $0x40] sm:$0xff]  ;;  %v4214_v17 = vpack.c.bf16 %v77_v8, %v71_v7 }
  0x5d   :  { %1406 = vmatpush1.bf16.msra.mxu1 %v3686_v35  ;;  %v3732_v11 = vld [vmem:[#allocation6 + $0x404] ss:$16 sps:$4 sm:$0xff]   ;;  %v3730_v13 = vld [vmem:[#allocation6 + $0x400] ss:$16 sps:$4 sm:$0xff]   ;;  %v4216_v18 = vpack.c.bf16 %v79_v10, %v73_v9  ;;  %v96_v35 = vld [vmem:[#allocation3 + $0xc8] sm:$0xff] }
  0x5e   :  { %1519 = vmatpush1.bf16.msra.mxu0 %v3687_v36  ;;  %1407 = vmatprep.subr.bf16.mxu1 %v3688_v37  ;;  %v3738_v21 = vld [vmem:[#allocation6 + $0x424] ss:$16 sps:$4 sm:$0xff]   ;;  %v3736_v23 = vld [vmem:[#allocation6 + $0x420] ss:$16 sps:$4 sm:$0xff]   ;;  %v102_v36 = vld [vmem:[#allocation3 + $0xf8] sm:$0xff] }
  0x5f   :  { %1520 = vmatprep.subr.bf16.mxu0 %v3690_v38  ;;  %v83_v27 = vld [vmem:[#allocation3 + $0x60] sm:$0xff]  ;;  %v89_v28 = vld [vmem:[#allocation3 + $0x90] sm:$0xff]  ;;  %v3771_v10 = vld [vmem:[#allocation6 + $0xcc] ss:$16 sps:$4 sm:$0xff]  }
  0x60   :  { %v85_v29 = vld [vmem:[#allocation3 + $0x70] sm:$0xff]  ;;  %v91_v30 = vld [vmem:[#allocation3 + $0xa0] sm:$0xff]  ;;  %v4226_v37 = vpack.c.bf16 %v89_v28, %v83_v27  ;;  %v4256_v27 = vpack.c.bf16 %v128_v20, %v122_v19  ;;  %v3775_v28 = vld [vmem:[#allocation6 + $0xe8] ss:$16 sps:$4 sm:$0xff]  }
  0x61   :  { %1408 = vmatpush1.bf16.msra.mxu1 %v3692_v39  ;;  %v3744_v31 = vld [vmem:[#allocation6 + $0x444] ss:$16 sps:$4 sm:$0xff]   ;;  %v3742_v33 = vld [vmem:[#allocation6 + $0x440] ss:$16 sps:$4 sm:$0xff]   ;;  %v4228_v38 = vpack.c.bf16 %v91_v30, %v85_v29  ;;  %v98_v39 = vld [vmem:[#allocation3 + $0xd8] sm:$0xff] }
  0x62   :  { %1521 = vmatpush1.bf16.msra.mxu0 %v3693_v40  ;;  %1409 = vmatprep.subr.bf16.mxu1 %v3694_v41  ;;  %v104_v40 = vld [vmem:[#allocation3 + $0x108] sm:$0xff]  ;;  %v3750_v41 = vld [vmem:[#allocation6 + $0x464] ss:$16 sps:$4 sm:$0xff]  }
  0x63   :  { %1522 = vmatprep.subr.bf16.mxu0 %v3696_v42  ;;  %v3753_v42 = vld [vmem:[#allocation6 + $0x6c] ss:$16 sps:$4 sm:$0xff]   ;;  %v95_v47 = vld [vmem:[#allocation3 + $0xc0] sm:$0xff]  ;;  %v101_v48 = vld [vmem:[#allocation3 + $0xf0] sm:$0xff] }
  0x64   :  { %v97_v49 = vld [vmem:[#allocation3 + $0xd0] sm:$0xff]  ;;  %v103_v50 = vld [vmem:[#allocation3 + $0x100] sm:$0xff] }
  0x65   :  { %1410 = vmatpush1.bf16.msra.mxu1 %v3698_v43  ;;  %v3748_v43 = vld [vmem:[#allocation6 + $0x460] ss:$16 sps:$4 sm:$0xff]   ;;  %v3768_v9 = vld [vmem:[#allocation6 + $0x4c4] ss:$16 sps:$4 sm:$0xff]  }
  0x66   :  { %1523 = vmatpush1.bf16.msra.mxu0 %v3699_v44  ;;  %1411 = vmatprep.subr.bf16.mxu1 %v3700_v45  ;;  %v4230_v44 = vpack.c.bf16 %v102_v36, %v96_v35  ;;  %v4232_v45 = vpack.c.bf16 %v104_v40, %v98_v39  ;;  %v109_v7 = vld [vmem:[#allocation3 + $0x130] sm:$0xff]  ;;  %v115_v8 = vld [vmem:[#allocation3 + $0x160] sm:$0xff]  ;;  %v3781_v36 = vld [vmem:[#allocation6 + $0x108] ss:$16 sps:$4 sm:$0xff]  }
  0x67   :  { %1524 = vmatprep.subr.bf16.mxu0 %v3702_v46  ;;  %v3751_v46 = vld [vmem:[#allocation6 + $0x68] ss:$16 sps:$4 sm:$0xff]   ;;  %v4252_v16 = vpack.c.bf16 %v115_v8, %v109_v7  ;;  %v119_v29 = vld [vmem:[#allocation3 + $0x180] sm:$0xff]  ;;  %v125_v30 = vld [vmem:[#allocation3 + $0x1b0] sm:$0xff] }
  0x68   :  { %v3778_v35 = vld [vmem:[#allocation6 + $0x500] ss:$16 sps:$4 sm:$0xff]   ;;  %v132_v39 = vld [vmem:[#allocation3 + $0x1e8] sm:$0xff]  ;;  %v138_v40 = vld [vmem:[#allocation3 + $0x218] sm:$0xff] }
  0x69   :  { %1412 = vmatpush1.bf16.msra.mxu1 %v3704_v51  ;;  %v3756_v51 = vld [vmem:[#allocation6 + $0x484] ss:$16 sps:$4 sm:$0xff]   ;;  %v146_v7 = vld [vmem:[#allocation3 + $0x258] sm:$0xff]  ;;  %v152_v8 = vld [vmem:[#allocation3 + $0x288] sm:$0xff] }
  0x6a   :  { %1525 = vmatpush1.bf16.msra.mxu0 %v3705_v52  ;;  %1413 = vmatprep.subr.bf16.mxu1 %v3706_v53  ;;  %v3759_v52 = vld [vmem:[#allocation6 + $0x8c] ss:$16 sps:$4 sm:$0xff]   ;;  %v3754_v53 = vld [vmem:[#allocation6 + $0x480] ss:$16 sps:$4 sm:$0xff]  }
  0x6b   :  { %1526 = vmatprep.subr.bf16.mxu0 %v3708_v56  ;;  %v3757_v56 = vld [vmem:[#allocation6 + $0x88] ss:$16 sps:$4 sm:$0xff]   ;;  %v143_v19 = vld [vmem:[#allocation3 + $0x240] sm:$0xff]  ;;  %v149_v20 = vld [vmem:[#allocation3 + $0x270] sm:$0xff] }
  0x6d   :  { %1414 = vmatpush1.bf16.msra.mxu1 %v3710_v57  ;;  %v108_v57 = vld [vmem:[#allocation3 + $0x128] sm:$0xff] }
  0x6e   :  { %1527 = vmatpush1.bf16.msra.mxu0 %v3711_v58  ;;  %1415 = vmatprep.subr.bf16.mxu1 %v3712_v59  ;;  %v114_v58 = vld [vmem:[#allocation3 + $0x158] sm:$0xff]  ;;  %v4238_v59 = vpack.c.bf16 %v101_v48, %v95_v47  ;;  %v3786_v47 = vld [vmem:[#allocation6 + $0x524] ss:$16 sps:$4 sm:$0xff]  }
  0x6f   :  { %1528 = vmatprep.subr.bf16.mxu0 %v3714_v60  ;;  %v4240_v60 = vpack.c.bf16 %v103_v50, %v97_v49  ;;  %v3789_v48 = vld [vmem:[#allocation6 + $0x12c] ss:$16 sps:$4 sm:$0xff]   ;;  %v3784_v49 = vld [vmem:[#allocation6 + $0x520] ss:$16 sps:$4 sm:$0xff]   ;;  %v4266_v50 = vpack.c.bf16 %v138_v40, %v132_v39  ;;  %v3810_v39 = vld [vmem:[#allocation6 + $0x5a4] ss:$16 sps:$4 sm:$0xff]  }
  0x70   :  { %v3813_v40 = vld [vmem:[#allocation6 + $0x1ac] ss:$16 sps:$4 sm:$0xff]  }
  0x71   :  { %1416 = vmatpush1.bf16.msra.mxu1 %v3716_v61  ;;  %v110_v61 = vld [vmem:[#allocation3 + $0x138] sm:$0xff] }
  0x72   :  { %1529 = vmatpush1.bf16.msra.mxu0 %v3717_v62  ;;  %1417 = vmatprep.subr.bf16.mxu1 %v3718_v63  ;;  %v116_v62 = vld [vmem:[#allocation3 + $0x168] sm:$0xff]  ;;  %v3762_v63 = vld [vmem:[#allocation6 + $0x4a4] ss:$16 sps:$4 sm:$0xff]  }
  0x73   :  { %1530 = vmatprep.subr.bf16.mxu0 %v3720_v0  ;;  %v3765_v0 = vld [vmem:[#allocation6 + $0xac] ss:$16 sps:$4 sm:$0xff]  }
  0x75   :  { %1418 = vmatpush1.bf16.msra.mxu1 %v3722_v1  ;;  %v3760_v1 = vld [vmem:[#allocation6 + $0x4a0] ss:$16 sps:$4 sm:$0xff]  }
  0x76   :  { %1531 = vmatpush1.bf16.msra.mxu0 %v3723_v2  ;;  %1419 = vmatprep.subr.bf16.mxu1 %v3724_v3  ;;  %v4242_v2 = vpack.c.bf16 %v114_v58, %v108_v57  ;;  %v4244_v3 = vpack.c.bf16 %v116_v62, %v110_v61  ;;  %v133_v57 = vld [vmem:[#allocation3 + $0x1f0] sm:$0xff]  ;;  %v139_v58 = vld [vmem:[#allocation3 + $0x220] sm:$0xff]  ;;  %v3795_v62 = vld [vmem:[#allocation6 + $0x14c] ss:$16 sps:$4 sm:$0xff]  }
  0x77   :  { %1532 = vmatprep.subr.bf16.mxu0 %v3726_v4  ;;  %v3763_v4 = vld [vmem:[#allocation6 + $0xa8] ss:$16 sps:$4 sm:$0xff]   ;;  %v3792_v61 = vld [vmem:[#allocation6 + $0x544] ss:$16 sps:$4 sm:$0xff]  }
  0x79   :  { %1420 = vmatpush1.bf16.msra.mxu1 %v3728_v5  ;;  %v107_v5 = vld [vmem:[#allocation3 + $0x120] sm:$0xff] }
  0x7a   :  { %1533 = vmatpush1.bf16.msra.mxu0 %v3729_v6  ;;  %1728 = vmatprep.subr.bf16.mxu1 %v3735_v12  ;;  %v113_v6 = vld [vmem:[#allocation3 + $0x150] sm:$0xff]  ;;  %v3769_v12 = vld [vmem:[#allocation6 + $0xc8] ss:$16 sps:$4 sm:$0xff]  }
  0x7b   :  { %1615 = vmatprep.subr.bf16.mxu0 %v3732_v11  ;;  %v3766_v11 = vld [vmem:[#allocation6 + $0x4c0] ss:$16 sps:$4 sm:$0xff]   ;;  %v4250_v15 = vpack.c.bf16 %v113_v6, %v107_v5  ;;  %v4276_v6 = vpack.c.bf16 %v139_v58, %v133_v57  ;;  %v3816_v57 = vld [vmem:[#allocation6 + $0x5c4] ss:$16 sps:$4 sm:$0xff]   ;;  %v3819_v58 = vld [vmem:[#allocation6 + $0x1cc] ss:$16 sps:$4 sm:$0xff]  }
  0x7c   :  { %1422 = vmatmul.mubr.bf16.vlgmr.msra.gmra.mrb[0].mxu1 %v4214_v17 }
  0x7d   :  { %1535 = vmatmul.mubr.bf16.vlgmr.msra.gmra.mrb[0].mxu0 %v4216_v18  ;;  %1729 = vmatpush1.bf16.msra.mxu1 %v3733_v14  ;;  %v126_v14 = vld [vmem:[#allocation3 + $0x1b8] sm:$0xff] }
  0x7e   :  { %1616 = vmatpush1.bf16.msra.mxu0 %v3730_v13  ;;  %1730 = vmatprep.subr.bf16.mxu1 %v3741_v22  ;;  %v120_v13 = vld [vmem:[#allocation3 + $0x188] sm:$0xff] }
  0x7f   :  { %1617 = vmatprep.subr.bf16.mxu0 %v3738_v21  ;;  %1431 = vmatprep.mubr.bf16.mxu1 %v4218_v24  ;;  %v3774_v21 = vld [vmem:[#allocation6 + $0x4e4] ss:$16 sps:$4 sm:$0xff]   ;;  %v3777_v22 = vld [vmem:[#allocation6 + $0xec] ss:$16 sps:$4 sm:$0xff]  }
  0x80   :  { %1544 = vmatprep.mubr.bf16.mxu0 %v4220_v25 }
  0x81   :  { %1731 = vmatpush1.bf16.msra.mxu1 %v3739_v26  ;;  %v4254_v26 = vpack.c.bf16 %v126_v14, %v120_v13  ;;  %v4280_v14 = vpack.c.bf16 %v152_v8, %v146_v7  ;;  %v3822_v7 = vld [vmem:[#allocation6 + $0x5e4] ss:$16 sps:$4 sm:$0xff]   ;;  %v3825_v8 = vld [vmem:[#allocation6 + $0x1ec] ss:$16 sps:$4 sm:$0xff]  }
  0x82   :  { %1618 = vmatpush1.bf16.msra.mxu0 %v3736_v23  ;;  %1732 = vmatprep.subr.bf16.mxu1 %v3747_v32  ;;  %v3772_v23 = vld [vmem:[#allocation6 + $0x4e0] ss:$16 sps:$4 sm:$0xff]  }
  0x83   :  { %1619 = vmatprep.subr.bf16.mxu0 %v3744_v31  ;;  %v121_v31 = vld [vmem:[#allocation3 + $0x190] sm:$0xff]  ;;  %v127_v32 = vld [vmem:[#allocation3 + $0x1c0] sm:$0xff] }
  0x84   :  { %1432 = vmatmul.mubr.bf16.gmra.mrb[4].mxu1 %v4226_v37 }
  0x85   :  { %1545 = vmatmul.mubr.bf16.gmra.mrb[4].mxu0 %v4228_v38  ;;  %1733 = vmatpush1.bf16.msra.mxu1 %v3745_v34  ;;  %v3783_v34 = vld [vmem:[#allocation6 + $0x10c] ss:$16 sps:$4 sm:$0xff]  }
  0x86   :  { %1620 = vmatpush1.bf16.msra.mxu0 %v3742_v33  ;;  %1734 = vmatprep.subr.bf16.mxu1 %v3753_v42  ;;  %v3780_v33 = vld [vmem:[#allocation6 + $0x504] ss:$16 sps:$4 sm:$0xff]   ;;  %v4264_v42 = vpack.c.bf16 %v127_v32, %v121_v31  ;;  %v156_v31 = vld [vmem:[#allocation3 + $0x2a8] sm:$0xff]  ;;  %v4286_v32 = vpack.c.bf16 %v149_v20, %v143_v19 }
  0x87   :  { %1621 = vmatprep.subr.bf16.mxu0 %v3750_v41  ;;  %1441 = vmatprep.mubr.bf16.mxu1 %v4230_v44  ;;  %v4262_v41 = vpack.c.bf16 %v125_v30, %v119_v29  ;;  %v3802_v29 = vld [vmem:[#allocation6 + $0x580] ss:$16 sps:$4 sm:$0xff]   ;;  %v3805_v30 = vld [vmem:[#allocation6 + $0x188] ss:$16 sps:$4 sm:$0xff]   ;;  %v3828_v20 = vld [vmem:[#allocation6 + $0x20c] ss:$16 sps:$4 sm:$0xff]  }
  0x88   :  { %1554 = vmatprep.mubr.bf16.mxu0 %v4232_v45  ;;  %v81_v19 = vld [vmem:[#allocation3 + $0x50] sm:$0xff] }
  0x89   :  { %1735 = vmatpush1.bf16.msra.mxu1 %v3751_v46  ;;  %v140_v46 = vld [vmem:[#allocation3 + $0x228] sm:$0xff] }
  0x8a   :  { %1622 = vmatpush1.bf16.msra.mxu0 %v3748_v43  ;;  %1736 = vmatprep.subr.bf16.mxu1 %v3759_v52  ;;  %v134_v43 = vld [vmem:[#allocation3 + $0x1f8] sm:$0xff] }
  0x8b   :  { %1623 = vmatprep.subr.bf16.mxu0 %v3756_v51  ;;  %v4268_v51 = vpack.c.bf16 %v140_v46, %v134_v43  ;;  %v3787_v52 = vld [vmem:[#allocation6 + $0x128] ss:$16 sps:$4 sm:$0xff]   ;;  %v3808_v43 = vld [vmem:[#allocation6 + $0x5a0] ss:$16 sps:$4 sm:$0xff]  }
  0x8c   :  { %1442 = vmatmul.mubr.bf16.gmra.mrb[8].mxu1 %v4238_v59  ;;  %v3811_v46 = vld [vmem:[#allocation6 + $0x1a8] ss:$16 sps:$4 sm:$0xff]  }
  0x8d   :  { %1555 = vmatmul.mubr.bf16.gmra.mrb[8].mxu0 %v4240_v60  ;;  %1737 = vmatpush1.bf16.msra.mxu1 %v3757_v56  ;;  %v137_v56 = vld [vmem:[#allocation3 + $0x210] sm:$0xff] }
  0x8e   :  { %1624 = vmatpush1.bf16.msra.mxu0 %v3754_v53  ;;  %1738 = vmatprep.subr.bf16.mxu1 %v3765_v0  ;;  %v131_v53 = vld [vmem:[#allocation3 + $0x1e0] sm:$0xff]  ;;  %v3793_v0 = vld [vmem:[#allocation6 + $0x148] ss:$16 sps:$4 sm:$0xff]  }
  0x8f   :  { %1625 = vmatprep.subr.bf16.mxu0 %v3762_v63  ;;  %1451 = vmatprep.mubr.bf16.mxu1 %v4242_v2  ;;  %v3790_v63 = vld [vmem:[#allocation6 + $0x540] ss:$16 sps:$4 sm:$0xff]   ;;  %v4274_v5 = vpack.c.bf16 %v137_v56, %v131_v53 }
  0x90   :  { %1564 = vmatprep.mubr.bf16.mxu0 %v4244_v3  ;;  %v157_v53 = vld [vmem:[#allocation3 + $0x2b0] sm:$0xff]  ;;  %v163_v56 = vld [vmem:[#allocation3 + $0x2e0] sm:$0xff] }
  0x91   :  { %1739 = vmatpush1.bf16.msra.mxu1 %v3763_v4  ;;  %v150_v4 = vld [vmem:[#allocation3 + $0x278] sm:$0xff] }
  0x92   :  { %1626 = vmatpush1.bf16.msra.mxu0 %v3760_v1  ;;  %1740 = vmatprep.subr.bf16.mxu1 %v3771_v10  ;;  %v144_v1 = vld [vmem:[#allocation3 + $0x248] sm:$0xff] }
  0x93   :  { %1627 = vmatprep.subr.bf16.mxu0 %v3768_v9  ;;  %v3798_v9 = vld [vmem:[#allocation6 + $0x564] ss:$16 sps:$4 sm:$0xff]   ;;  %v3801_v10 = vld [vmem:[#allocation6 + $0x16c] ss:$16 sps:$4 sm:$0xff]   ;;  %v4278_v13 = vpack.c.bf16 %v150_v4, %v144_v1 }
  0x94   :  { %1452 = vmatmul.mubr.bf16.gmra.mrb[12].mxu1 %v4250_v15  ;;  %v76_v1 = vld [vmem:[#allocation3 + $0x28] sm:$0xff]  ;;  %v82_v4 = vld [vmem:[#allocation3 + $0x58] sm:$0xff] }
  0x95   :  { %1565 = vmatmul.mubr.bf16.gmra.mrb[12].mxu0 %v4252_v16  ;;  %1741 = vmatpush1.bf16.msra.mxu1 %v3769_v12  ;;  %v3799_v12 = vld [vmem:[#allocation6 + $0x168] ss:$16 sps:$4 sm:$0xff]  }
  0x96   :  { %1628 = vmatpush1.bf16.msra.mxu0 %v3766_v11  ;;  %1742 = vmatprep.subr.bf16.mxu1 %v3777_v22  ;;  %v3796_v11 = vld [vmem:[#allocation6 + $0x560] ss:$16 sps:$4 sm:$0xff]  }
  0x97   :  { %1629 = vmatprep.subr.bf16.mxu0 %v3774_v21  ;;  %1461 = vmatprep.mubr.bf16.mxu1 %v4254_v26  ;;  %v145_v21 = vld [vmem:[#allocation3 + $0x250] sm:$0xff]  ;;  %v151_v22 = vld [vmem:[#allocation3 + $0x280] sm:$0xff] }
  0x98   :  { %1574 = vmatprep.mubr.bf16.mxu0 %v4256_v27 }
  0x99   :  { %1743 = vmatpush1.bf16.msra.mxu1 %v3775_v28  ;;  %v3807_v28 = vld [vmem:[#allocation6 + $0x18c] ss:$16 sps:$4 sm:$0xff]  }
  0x9a   :  { %1630 = vmatpush1.bf16.msra.mxu0 %v3772_v23  ;;  %1744 = vmatprep.subr.bf16.mxu1 %v3783_v34  ;;  %v3804_v23 = vld [vmem:[#allocation6 + $0x584] ss:$16 sps:$4 sm:$0xff]   ;;  %v162_v34 = vld [vmem:[#allocation3 + $0x2d8] sm:$0xff] }
  0x9b   :  { %1631 = vmatprep.subr.bf16.mxu0 %v3780_v33  ;;  %v4288_v33 = vpack.c.bf16 %v151_v22, %v145_v21  ;;  %v88_v21 = vld [vmem:[#allocation3 + $0x88] sm:$0xff]  ;;  %v94_v22 = vld [vmem:[#allocation3 + $0xb8] sm:$0xff] }
  0x9c   :  { %1462 = vmatmul.mubr.bf16.gmra.mrb[16].mxu1 %v4262_v41 }
  0x9d   :  { %1575 = vmatmul.mubr.bf16.gmra.mrb[16].mxu0 %v4264_v42  ;;  %1745 = vmatpush1.bf16.msra.mxu1 %v3781_v36  ;;  %v164_v36 = vld [vmem:[#allocation3 + $0x2e8] sm:$0xff] }
  0x9e   :  { %1632 = vmatpush1.bf16.msra.mxu0 %v3778_v35  ;;  %1746 = vmatprep.subr.bf16.mxu1 %v3789_v48  ;;  %v158_v35 = vld [vmem:[#allocation3 + $0x2b8] sm:$0xff] }
  0x9f   :  { %1633 = vmatprep.subr.bf16.mxu0 %v3786_v47  ;;  %1471 = vmatprep.mubr.bf16.mxu1 %v4266_v50  ;;  %v4290_v47 = vpack.c.bf16 %v162_v34, %v156_v31  ;;  %v4292_v48 = vpack.c.bf16 %v164_v36, %v158_v35  ;;  %v3829_v31 = vld [vmem:[#allocation6 + $0x228] ss:$16 sps:$4 sm:$0xff]   ;;  %v87_v34 = vld [vmem:[#allocation3 + $0x80] sm:$0xff]  ;;  %v93_v35 = vld [vmem:[#allocation3 + $0xb0] sm:$0xff] }
  0xa0   :  { %1584 = vmatprep.mubr.bf16.mxu0 %v4268_v51  ;;  %v3834_v36 = vld [vmem:[#allocation6 + $0x24c] ss:$16 sps:$4 sm:$0xff]  }
  0xa1   :  { %1747 = vmatpush1.bf16.msra.mxu1 %v3787_v52  ;;  %v161_v52 = vld [vmem:[#allocation3 + $0x2d0] sm:$0xff] }
  0xa2   :  { %1634 = vmatpush1.bf16.msra.mxu0 %v3784_v49  ;;  %1748 = vmatprep.subr.bf16.mxu1 %v3795_v62  ;;  %v155_v49 = vld [vmem:[#allocation3 + $0x2a0] sm:$0xff] }
  0xa3   :  { %1635 = vmatprep.subr.bf16.mxu0 %v3792_v61  ;;  %v3814_v61 = vld [vmem:[#allocation6 + $0x5c0] ss:$16 sps:$4 sm:$0xff]   ;;  %v4298_v62 = vpack.c.bf16 %v161_v52, %v155_v49  ;;  %v3837_v49 = vld [vmem:[#allocation6 + $0x26c] ss:$16 sps:$4 sm:$0xff]  }
  0xa4   :  { %1472 = vmatmul.mubr.bf16.gmra.mrb[20].mxu1 %v4274_v5  ;;  %v99_v52 = vld [vmem:[#allocation3 + $0xe0] sm:$0xff] }
  0xa5   :  { %1585 = vmatmul.mubr.bf16.gmra.mrb[20].mxu0 %v4276_v6  ;;  %1749 = vmatpush1.bf16.msra.mxu1 %v3793_v0  ;;  %v3817_v0 = vld [vmem:[#allocation6 + $0x1c8] ss:$16 sps:$4 sm:$0xff]  }
  0xa6   :  { %1636 = vmatpush1.bf16.msra.mxu0 %v3790_v63  ;;  %1750 = vmatprep.subr.bf16.mxu1 %v3801_v10  ;;  %v4300_v63 = vpack.c.bf16 %v163_v56, %v157_v53  ;;  %v3823_v10 = vld [vmem:[#allocation6 + $0x1e8] ss:$16 sps:$4 sm:$0xff]   ;;  %v105_v53 = vld [vmem:[#allocation3 + $0x110] sm:$0xff]  ;;  %v3840_v56 = vld [vmem:[#allocation6 + $0x28c] ss:$16 sps:$4 sm:$0xff]  }
  0xa7   :  { %1637 = vmatprep.subr.bf16.mxu0 %v3798_v9  ;;  %1481 = vmatprep.mubr.bf16.mxu1 %v4278_v13  ;;  %v3820_v9 = vld [vmem:[#allocation6 + $0x5e0] ss:$16 sps:$4 sm:$0xff]  }
  0xa8   :  { %1594 = vmatprep.mubr.bf16.mxu0 %v4280_v14 }
  0xa9   :  { %1751 = vmatpush1.bf16.msra.mxu1 %v3799_v12  ;;  %v75_v12 = vld [vmem:[#allocation3 + $0x20] sm:$0xff] }
  0xaa   :  { %1638 = vmatpush1.bf16.msra.mxu0 %v3796_v11  ;;  %1752 = vmatprep.subr.bf16.mxu1 %v3807_v28  ;;  %v4302_v11 = vpack.c.bf16 %v82_v4, %v76_v1  ;;  %v3826_v28 = vld [vmem:[#allocation6 + $0x208] ss:$16 sps:$4 sm:$0xff]   ;;  %v3843_v1 = vld [vmem:[#allocation6 + $0x2ac] ss:$16 sps:$4 sm:$0xff]  }
  0xab   :  { %1639 = vmatprep.subr.bf16.mxu0 %v3804_v23  ;;  %v4308_v23 = vpack.c.bf16 %v81_v19, %v75_v12  ;;  %v3841_v4 = vld [vmem:[#allocation6 + $0x2a8] ss:$16 sps:$4 sm:$0xff]  }
  0xac   :  { %1482 = vmatmul.mubr.bf16.gmra.mrb[24].mxu1 %v4286_v32  ;;  %v3844_v12 = vld [vmem:[#allocation6 + $0x2c8] ss:$16 sps:$4 sm:$0xff]  }
  0xad   :  { %1595 = vmatmul.mubr.bf16.gmra.mrb[24].mxu0 %v4288_v33  ;;  %1753 = vmatpush1.bf16.msra.mxu1 %v3805_v30  ;;  %v3831_v30 = vld [vmem:[#allocation6 + $0x22c] ss:$16 sps:$4 sm:$0xff]  }
  0xae   :  { %1640 = vmatpush1.bf16.msra.mxu0 %v3802_v29  ;;  %1754 = vmatprep.subr.bf16.mxu1 %v3813_v40  ;;  %v4310_v29 = vpack.c.bf16 %v94_v22, %v88_v21  ;;  %v4316_v40 = vpack.c.bf16 %v93_v35, %v87_v34  ;;  %v3847_v21 = vld [vmem:[#allocation6 + $0x2e8] ss:$16 sps:$4 sm:$0xff]   ;;  %v129_v22 = vld [vmem:[#allocation3 + $0x1d0] sm:$0xff]  ;;  %v3855_v35 = vld [vmem:[#allocation6 + $0x32c] ss:$16 sps:$4 sm:$0xff]  }
  0xaf   :  { %1641 = vmatprep.subr.bf16.mxu0 %v3810_v39  ;;  %1491 = vmatprep.mubr.bf16.mxu1 %v4290_v47  ;;  %v106_v39 = vld [vmem:[#allocation3 + $0x118] sm:$0xff] }
  0xb0   :  { %1604 = vmatprep.mubr.bf16.mxu0 %v4292_v48  ;;  %v3850_v34 = vld [vmem:[#allocation6 + $0x308] ss:$16 sps:$4 sm:$0xff]  }
  0xb1   :  { %1755 = vmatpush1.bf16.msra.mxu1 %v3811_v46 }
  0xb2   :  { %1642 = vmatpush1.bf16.msra.mxu0 %v3808_v43  ;;  %1756 = vmatprep.subr.bf16.mxu1 %v3819_v58  ;;  %v3832_v43 = vld [vmem:[#allocation6 + $0x248] ss:$16 sps:$4 sm:$0xff]   ;;  %v4324_v58 = vpack.c.bf16 %v105_v53, %v99_v52  ;;  %v3927_v52 = vld [vmem:[#allocation8 + $0x14] ss:$8 sps:$4 sm:$0xff]  }
  0xb3   :  { %1643 = vmatprep.subr.bf16.mxu0 %v3816_v57  ;;  %v118_v57 = vld [vmem:[#allocation3 + $0x178] sm:$0xff] }
  0xb4   :  { %1492 = vmatmul.mubr.bf16.gmra.mrb[28].mxu1 %v4298_v62  ;;  %v154_v53 = vld [vmem:[#allocation3 + $0x298] sm:$0xff] }
  0xb5   :  { %1605 = vmatmul.mubr.bf16.gmra.mrb[28].mxu0 %v4300_v63  ;;  %1757 = vmatpush1.bf16.msra.mxu1 %v3817_v0 }
  0xb6   :  { %1644 = vmatpush1.bf16.msra.mxu0 %v3814_v61  ;;  %1758 = vmatprep.subr.bf16.mxu1 %v3825_v8  ;;  %v3838_v61 = vld [vmem:[#allocation6 + $0x288] ss:$16 sps:$4 sm:$0xff]   ;;  %v3846_v8 = vld [vmem:[#allocation6 + $0x2cc] ss:$16 sps:$4 sm:$0xff]  }
  0xb7   :  { %1645 = vmatprep.subr.bf16.mxu0 %v3822_v7  ;;  %1647 = vmatprep.mubr.bf16.mxu0 %v4302_v11  ;;  %v117_v7 = vld [vmem:[#allocation3 + $0x170] sm:$0xff] }
  0xb8   :  { %1760 = vmatprep.mubr.bf16.mxu1 %v4208_v54  ;;  %v100_v54 = vld [vmem:[#allocation3 + $0xe8] sm:$0xff] }
  0xb9   :  { %1759 = vmatpush1.bf16.msra.mxu1 %v3823_v10  ;;  %v4318_v46 = vpack.c.bf16 %v106_v39, %v100_v54  ;;  %v3922_v54 = vld [vmem:[#allocation8] ss:$8 sps:$4 sm:$0xff]  }
  0xba   :  { %1646 = vmatpush1.bf16.msra.mxu0 %v3820_v9  ;;  %1841 = vmatprep.subr.bf16.mxu1 %v3828_v20  ;;  %v130_v9 = vld [vmem:[#allocation3 + $0x1d8] sm:$0xff] }
  0xbb   :  { %v3849_v20 = vld [vmem:[#allocation6 + $0x2ec] ss:$16 sps:$4 sm:$0xff]   ;;  %v3853_v39 = vld [vmem:[#allocation6 + $0x328] ss:$16 sps:$4 sm:$0xff]  }
  0xbc   :  { %1761 = vmatmul.mubr.bf16.vlgmr.msra.gmra.mrb[32].mxu1 %v4214_v17  ;;  %v3835_v17 = vld [vmem:[#allocation6 + $0x268] ss:$16 sps:$4 sm:$0xff]  }
  0xbd   :  { %1648 = vmatmul.mubr.bf16.vlgmr.msra.gmra.mrb[0].mxu0 %v4308_v23  ;;  %1842 = vmatpush1.bf16.msra.mxu1 %v3826_v28  ;;  %v3852_v28 = vld [vmem:[#allocation6 + $0x30c] ss:$16 sps:$4 sm:$0xff]  }
  0xbe   :  { %1657 = vmatprep.mubr.bf16.mxu0 %v4310_v29  ;;  %1843 = vmatprep.subr.bf16.mxu1 %v3831_v30  ;;  %v142_v30 = vld [vmem:[#allocation3 + $0x238] sm:$0xff] }
  0xbf   :  { %1770 = vmatprep.mubr.bf16.mxu1 %v4218_v24  ;;  %v112_v24 = vld [vmem:[#allocation3 + $0x148] sm:$0xff] }
  0xc0   :  { %v4326_v0 = vpack.c.bf16 %v118_v57, %v112_v24  ;;  %v3861_v57 = vld [vmem:[#allocation6 + $0x36c] ss:$16 sps:$4 sm:$0xff]  }
  0xc1   :  { %1844 = vmatpush1.bf16.msra.mxu1 %v3829_v31 }
  0xc2   :  { %1845 = vmatprep.subr.bf16.mxu1 %v3834_v36 }
  0xc4   :  { %1771 = vmatmul.mubr.bf16.gmra.mrb[36].mxu1 %v4226_v37  ;;  %v111_v37 = vld [vmem:[#allocation3 + $0x140] sm:$0xff] }
  0xc5   :  { %1658 = vmatmul.mubr.bf16.gmra.mrb[4].mxu0 %v4316_v40  ;;  %1846 = vmatpush1.bf16.msra.mxu1 %v3832_v43  ;;  %v4332_v10 = vpack.c.bf16 %v117_v7, %v111_v37  ;;  %v135_v43 = vld [vmem:[#allocation3 + $0x200] sm:$0xff]  ;;  %v153_v7 = vld [vmem:[#allocation3 + $0x290] sm:$0xff] }
  0xc6   :  { %1667 = vmatprep.mubr.bf16.mxu0 %v4318_v46  ;;  %1847 = vmatprep.subr.bf16.mxu1 %v3837_v49  ;;  %v141_v49 = vld [vmem:[#allocation3 + $0x230] sm:$0xff]  ;;  %v147_v37 = vld [vmem:[#allocation3 + $0x260] sm:$0xff] }
  0xc7   :  { %1780 = vmatprep.mubr.bf16.mxu1 %v4230_v44  ;;  %v124_v44 = vld [vmem:[#allocation3 + $0x1a8] sm:$0xff]  ;;  %v4348_v24 = vpack.c.bf16 %v141_v49, %v135_v43  ;;  %v3939_v43 = vld [vmem:[#allocation8 + $0x54] ss:$8 sps:$4 sm:$0xff]   ;;  %v3937_v49 = vld [vmem:[#allocation8 + $0x50] ss:$8 sps:$4 sm:$0xff]  }
  0xc8   :  { %v4334_v19 = vpack.c.bf16 %v130_v9, %v124_v44  ;;  %v166_v44 = vld [vmem:[#allocation3 + $0x2f8] sm:$0xff]  ;;  %v3928_v9 = vld [vmem:[#allocation8 + $0x20] ss:$8 sps:$4 sm:$0xff]  }
  0xc9   :  { %1848 = vmatpush1.bf16.msra.mxu1 %v3835_v17  ;;  %v3858_v17 = vld [vmem:[#allocation6 + $0x34c] ss:$16 sps:$4 sm:$0xff]  }
  0xca   :  { %1849 = vmatprep.subr.bf16.mxu1 %v3840_v56  ;;  %v3856_v56 = vld [vmem:[#allocation6 + $0x348] ss:$16 sps:$4 sm:$0xff]  }
  0xcc   :  { %1781 = vmatmul.mubr.bf16.gmra.mrb[40].mxu1 %v4238_v59  ;;  %v123_v59 = vld [vmem:[#allocation3 + $0x1a0] sm:$0xff] }
  0xcd   :  { %1668 = vmatmul.mubr.bf16.gmra.mrb[8].mxu0 %v4324_v58  ;;  %1850 = vmatpush1.bf16.msra.mxu1 %v3838_v61  ;;  %v4340_v31 = vpack.c.bf16 %v129_v22, %v123_v59  ;;  %v3931_v22 = vld [vmem:[#allocation8 + $0x30] ss:$8 sps:$4 sm:$0xff]  }
  0xce   :  { %1677 = vmatprep.mubr.bf16.mxu0 %v4326_v0  ;;  %1851 = vmatprep.subr.bf16.mxu1 %v3843_v1  ;;  %v3930_v1 = vld [vmem:[#allocation8 + $0x24] ss:$8 sps:$4 sm:$0xff]  }
  0xcf   :  { %1790 = vmatprep.mubr.bf16.mxu1 %v4242_v2  ;;  %v136_v2 = vld [vmem:[#allocation3 + $0x208] sm:$0xff] }
  0xd0   :  { %v4342_v36 = vpack.c.bf16 %v142_v30, %v136_v2  ;;  %v159_v2 = vld [vmem:[#allocation3 + $0x2c0] sm:$0xff]  ;;  %v165_v30 = vld [vmem:[#allocation3 + $0x2f0] sm:$0xff] }
  0xd1   :  { %1852 = vmatpush1.bf16.msra.mxu1 %v3841_v4  ;;  %v3859_v4 = vld [vmem:[#allocation6 + $0x368] ss:$16 sps:$4 sm:$0xff]  }
  0xd2   :  { %1853 = vmatprep.subr.bf16.mxu1 %v3846_v8  ;;  %v160_v8 = vld [vmem:[#allocation3 + $0x2c8] sm:$0xff] }
  0xd3   :  { %v4358_v59 = vpack.c.bf16 %v166_v44, %v160_v8  ;;  %v3954_v8 = vld [vmem:[#allocation8 + $0xa4] ss:$8 sps:$4 sm:$0xff]   ;;  %v3886_v44 = vld [vmem:[#allocation6 + $0x488] ss:$16 sps:$4 sm:$0xff]  }
  0xd4   :  { %1791 = vmatmul.mubr.bf16.gmra.mrb[44].mxu1 %v4250_v15  ;;  %v3924_v15 = vld [vmem:[#allocation8 + $0x4] ss:$8 sps:$4 sm:$0xff]  }
  0xd5   :  { %1678 = vmatmul.mubr.bf16.gmra.mrb[12].mxu0 %v4332_v10  ;;  %1854 = vmatpush1.bf16.msra.mxu1 %v3844_v12  ;;  %v3862_v12 = vld [vmem:[#allocation6 + $0x388] ss:$16 sps:$4 sm:$0xff]  }
  0xd6   :  { %1687 = vmatprep.mubr.bf16.mxu0 %v4334_v19  ;;  %1855 = vmatprep.subr.bf16.mxu1 %v3849_v20  ;;  %v4356_v20 = vpack.c.bf16 %v153_v7, %v147_v37  ;;  %v3946_v37 = vld [vmem:[#allocation8 + $0x80] ss:$8 sps:$4 sm:$0xff]   ;;  %v3951_v7 = vld [vmem:[#allocation8 + $0x94] ss:$8 sps:$4 sm:$0xff]  }
  0xd7   :  { %1800 = vmatprep.mubr.bf16.mxu1 %v4254_v26  ;;  %v148_v26 = vld [vmem:[#allocation3 + $0x268] sm:$0xff]  ;;  %2687 = vmatprep.subr.bf16.mxu0 %v3924_v15 }
  0xd8   :  { %2688 = vmatpush1.bf16.msra.mxu0 %v3922_v54  ;;  %v4350_v61 = vpack.c.bf16 %v154_v53, %v148_v26  ;;  %v4364_v54 = vpack.c.bf16 %v165_v30, %v159_v2  ;;  %v3873_v15 = vld [vmem:[#allocation6 + $0x3ec] ss:$16 sps:$4 sm:$0xff]   ;;  %v3874_v26 = vld [vmem:[#allocation6 + $0x408] ss:$16 sps:$4 sm:$0xff]  }
  0xd9   :  { %1856 = vmatpush1.bf16.msra.mxu1 %v3847_v21  ;;  %2689 = vmatprep.subr.bf16.mxu0 %v3927_v52  ;;  %v3867_v21 = vld [vmem:[#allocation6 + $0x3ac] ss:$16 sps:$4 sm:$0xff]   ;;  %v3940_v53 = vld [vmem:[#allocation8 + $0x60] ss:$8 sps:$4 sm:$0xff]  }
  0xda   :  { %1857 = vmatprep.subr.bf16.mxu1 %v3852_v28  ;;  %v3865_v28 = vld [vmem:[#allocation6 + $0x3a8] ss:$16 sps:$4 sm:$0xff]   ;;  %v3879_v52 = vld [vmem:[#allocation6 + $0x42c] ss:$16 sps:$4 sm:$0xff]  }
  0xdb   :  { %v3897_v2 = vld [vmem:[#allocation6 + $0x4ec] ss:$16 sps:$4 sm:$0xff]   ;;  %v3958_v30 = vld [vmem:[#allocation8 + $0xc0] ss:$8 sps:$4 sm:$0xff]  }
  0xdc   :  { %1801 = vmatmul.mubr.bf16.gmra.mrb[48].mxu1 %v4262_v41  ;;  %v3925_v41 = vld [vmem:[#allocation8 + $0x10] ss:$8 sps:$4 sm:$0xff]  }
  0xdd   :  { %1688 = vmatmul.mubr.bf16.gmra.mrb[16].mxu0 %v4340_v31  ;;  %1858 = vmatpush1.bf16.msra.mxu1 %v3850_v34  ;;  %v3870_v34 = vld [vmem:[#allocation6 + $0x3cc] ss:$16 sps:$4 sm:$0xff]  }
  0xde   :  { %1697 = vmatprep.mubr.bf16.mxu0 %v4342_v36  ;;  %1859 = vmatprep.subr.bf16.mxu1 %v3855_v35  ;;  %v3868_v35 = vld [vmem:[#allocation6 + $0x3c8] ss:$16 sps:$4 sm:$0xff]  }
  0xdf   :  { %1810 = vmatprep.mubr.bf16.mxu1 %v4266_v50  ;;  %v3864_v50 = vld [vmem:[#allocation6 + $0x38c] ss:$16 sps:$4 sm:$0xff]   ;;  %2690 = vmatpush1.bf16.msra.mxu0 %v3925_v41 }
  0xe0   :  { %2691 = vmatprep.subr.bf16.mxu0 %v3930_v1  ;;  %v3948_v41 = vld [vmem:[#allocation8 + $0x84] ss:$8 sps:$4 sm:$0xff]   ;;  %v3880_v1 = vld [vmem:[#allocation6 + $0x448] ss:$16 sps:$4 sm:$0xff]  }
  0xe1   :  { %1860 = vmatpush1.bf16.msra.mxu1 %v3853_v39  ;;  %v3934_v39 = vld [vmem:[#allocation8 + $0x40] ss:$8 sps:$4 sm:$0xff]  }
  0xe2   :  { %1861 = vmatprep.subr.bf16.mxu1 %v3858_v17  ;;  %v3942_v17 = vld [vmem:[#allocation8 + $0x64] ss:$8 sps:$4 sm:$0xff]  }
  0xe3   :  { %2692 = vmatpush1.bf16.msra.mxu0 %v3928_v9  ;;  %v3891_v9 = vld [vmem:[#allocation6 + $0x4ac] ss:$16 sps:$4 sm:$0xff]  }
  0xe4   :  { %1811 = vmatmul.mubr.bf16.gmra.mrb[52].mxu1 %v4274_v5  ;;  %v3933_v5 = vld [vmem:[#allocation8 + $0x34] ss:$8 sps:$4 sm:$0xff]  }
  0xe5   :  { %1698 = vmatmul.mubr.bf16.gmra.mrb[20].mxu0 %v4348_v24  ;;  %1862 = vmatpush1.bf16.msra.mxu1 %v3856_v56  ;;  %v3945_v56 = vld [vmem:[#allocation8 + $0x74] ss:$8 sps:$4 sm:$0xff]  }
  0xe6   :  { %1707 = vmatprep.mubr.bf16.mxu0 %v4350_v61  ;;  %1863 = vmatprep.subr.bf16.mxu1 %v3861_v57  ;;  %v3943_v57 = vld [vmem:[#allocation8 + $0x70] ss:$8 sps:$4 sm:$0xff]  }
  0xe7   :  { %1820 = vmatprep.mubr.bf16.mxu1 %v4278_v13  ;;  %v3936_v13 = vld [vmem:[#allocation8 + $0x44] ss:$8 sps:$4 sm:$0xff]   ;;  %2693 = vmatprep.subr.bf16.mxu0 %v3933_v5  ;;  %v3955_v5 = vld [vmem:[#allocation8 + $0xb0] ss:$8 sps:$4 sm:$0xff]  }
  0xe8   :  { %2694 = vmatpush1.bf16.msra.mxu0 %v3931_v22  ;;  %v3960_v22 = vld [vmem:[#allocation8 + $0xc4] ss:$8 sps:$4 sm:$0xff]  }
  0xe9   :  { %1864 = vmatpush1.bf16.msra.mxu1 %v3859_v4  ;;  %2695 = vmatprep.subr.bf16.mxu0 %v3936_v13  ;;  %v3885_v4 = vld [vmem:[#allocation6 + $0x46c] ss:$16 sps:$4 sm:$0xff]  }
  0xea   :  { %1865 = vmatprep.subr.bf16.mxu1 %v3864_v50  ;;  %v3949_v50 = vld [vmem:[#allocation8 + $0x90] ss:$8 sps:$4 sm:$0xff]   ;;  %v3963_v13 = vld [vmem:[#allocation8 + $0xd4] ss:$8 sps:$4 sm:$0xff]  }
  0xec   :  { %1821 = vmatmul.mubr.bf16.gmra.mrb[56].mxu1 %v4286_v32  ;;  %v3871_v32 = vld [vmem:[#allocation6 + $0x3e8] ss:$16 sps:$4 sm:$0xff]   ;;  %2696 = vmatpush1.bf16.msra.mxu0 %v3934_v39  ;;  %v3903_v39 = vld [vmem:[#allocation6 + $0x52c] ss:$16 sps:$4 sm:$0xff]  }
  0xed   :  { %1708 = vmatmul.mubr.bf16.gmra.mrb[24].mxu0 %v4356_v20  ;;  %1866 = vmatpush1.bf16.msra.mxu1 %v3862_v12  ;;  %v3952_v12 = vld [vmem:[#allocation8 + $0xa0] ss:$8 sps:$4 sm:$0xff]  }
  0xee   :  { %1717 = vmatprep.mubr.bf16.mxu0 %v4358_v59  ;;  %1867 = vmatprep.subr.bf16.mxu1 %v3867_v21  ;;  %v3957_v21 = vld [vmem:[#allocation8 + $0xb4] ss:$8 sps:$4 sm:$0xff]  }
  0xef   :  { %1830 = vmatprep.mubr.bf16.mxu1 %v4290_v47  ;;  %v3876_v47 = vld [vmem:[#allocation6 + $0x40c] ss:$16 sps:$4 sm:$0xff]   ;;  %2697 = vmatprep.subr.bf16.mxu0 %v3939_v43  ;;  %v3964_v43 = vld [vmem:[#allocation8 + $0xe0] ss:$8 sps:$4 sm:$0xff]  }
  0xf0   :  { %2698 = vmatpush1.bf16.msra.mxu0 %v3937_v49  ;;  %v3904_v49 = vld [vmem:[#allocation6 + $0x548] ss:$16 sps:$4 sm:$0xff]  }
  0xf1   :  { %1868 = vmatpush1.bf16.msra.mxu1 %v3865_v28  ;;  %2699 = vmatprep.subr.bf16.mxu0 %v3942_v17  ;;  %v3892_v28 = vld [vmem:[#allocation6 + $0x4c8] ss:$16 sps:$4 sm:$0xff]   ;;  %v3909_v17 = vld [vmem:[#allocation6 + $0x56c] ss:$16 sps:$4 sm:$0xff]  }
  0xf2   :  { %1869 = vmatprep.subr.bf16.mxu1 %v3870_v34  ;;  %v3961_v34 = vld [vmem:[#allocation8 + $0xd0] ss:$8 sps:$4 sm:$0xff]  }
  0xf4   :  { %1831 = vmatmul.mubr.bf16.gmra.mrb[60].mxu1 %v4298_v62  ;;  %v3877_v62 = vld [vmem:[#allocation6 + $0x428] ss:$16 sps:$4 sm:$0xff]   ;;  %2700 = vmatpush1.bf16.msra.mxu0 %v3940_v53 }
  0xf5   :  { %1718 = vmatmul.mubr.bf16.gmra.mrb[28].mxu0 %v4364_v54  ;;  %1870 = vmatpush1.bf16.msra.mxu1 %v3868_v35  ;;  %v3966_v35 = vld [vmem:[#allocation8 + $0xe4] ss:$8 sps:$4 sm:$0xff]   ;;  %v3913_v53 = vld [vmem:[#allocation6 + $0x5a8] ss:$16 sps:$4 sm:$0xff]  }
  0xf6   :  { %1873 = vmatprep.mubr.bf16.mxu1 %v4210_v55  ;;  %1871 = vmatprep.subr.bf16.mxu1 %v3873_v15  ;;  %v3882_v55 = vld [vmem:[#allocation6 + $0x44c] ss:$16 sps:$4 sm:$0xff]   ;;  %v3898_v15 = vld [vmem:[#allocation6 + $0x508] ss:$16 sps:$4 sm:$0xff]  }
  0xf7   :  { %2701 = vmatprep.subr.bf16.mxu0 %v3945_v56  ;;  %v3918_v56 = vld [vmem:[#allocation6 + $0x5cc] ss:$16 sps:$4 sm:$0xff]  }
  0xf8   :  { %2702 = vmatpush1.bf16.msra.mxu0 %v3943_v57  ;;  %v3972_v57 = vld [vmem:[#allocation8 + $0x104] ss:$8 sps:$4 sm:$0xff]  }
  0xf9   :  { %1872 = vmatpush1.bf16.msra.mxu1 %v3871_v32  ;;  %2703 = vmatprep.subr.bf16.mxu0 %v3948_v41  ;;  %v3969_v32 = vld [vmem:[#allocation8 + $0xf4] ss:$8 sps:$4 sm:$0xff]  }
  0xfa   :  { %1954 = vmatprep.subr.bf16.mxu1 %v3876_v47  ;;  %v3967_v47 = vld [vmem:[#allocation8 + $0xf0] ss:$8 sps:$4 sm:$0xff]  }
  0xfc   :  { %1874 = vmatmul.mubr.bf16.vlgmr.msra.gmra.mrb[32].mxu1 %v4216_v18  ;;  %v3883_v18 = vld [vmem:[#allocation6 + $0x468] ss:$16 sps:$4 sm:$0xff]   ;;  %2704 = vmatpush1.bf16.msra.mxu0 %v3946_v37 }
  0xfd   :  { %1955 = vmatpush1.bf16.msra.mxu1 %v3874_v26  ;;  %1883 = vmatprep.mubr.bf16.mxu1 %v4220_v25  ;;  %v3888_v25 = vld [vmem:[#allocation6 + $0x48c] ss:$16 sps:$4 sm:$0xff]   ;;  %v3907_v26 = vld [vmem:[#allocation6 + $0x568] ss:$16 sps:$4 sm:$0xff]  }
  0xfe   :  { %1956 = vmatprep.subr.bf16.mxu1 %v3879_v52  ;;  %2705 = vmatprep.subr.bf16.mxu0 %v3951_v7  ;;  %v3915_v52 = vld [vmem:[#allocation6 + $0x5ac] ss:$16 sps:$4 sm:$0xff]  }
 0x100   :  { %2706 = vmatpush1.bf16.msra.mxu0 %v3949_v50 }
 0x101   :  { %1957 = vmatpush1.bf16.msra.mxu1 %v3877_v62  ;;  %2707 = vmatprep.subr.bf16.mxu0 %v3954_v8  ;;  %v3921_v62 = vld [vmem:[#allocation6 + $0x5ec] ss:$16 sps:$4 sm:$0xff]  }
 0x102   :  { %1958 = vmatprep.subr.bf16.mxu1 %v3882_v55 }
 0x104   :  { %1884 = vmatmul.mubr.bf16.gmra.mrb[36].mxu1 %v4228_v38  ;;  %v3889_v38 = vld [vmem:[#allocation6 + $0x4a8] ss:$16 sps:$4 sm:$0xff]   ;;  %2708 = vmatpush1.bf16.msra.mxu0 %v3952_v12  ;;  %v4454_v12 = vld [vmem:[%s4639_s2] sm:$0xf] }
 0x105   :  { %1959 = vmatpush1.bf16.msra.mxu1 %v3880_v1  ;;  %1893 = vmatprep.mubr.bf16.mxu1 %v4232_v45  ;;  %v3894_v45 = vld [vmem:[#allocation6 + $0x4cc] ss:$16 sps:$4 sm:$0xff]  }
 0x106   :  { %1960 = vmatprep.subr.bf16.mxu1 %v3885_v4  ;;  %2709 = vmatprep.subr.bf16.mxu0 %v3957_v21 }
 0x108   :  { %2710 = vmatpush1.bf16.msra.mxu0 %v3955_v5 }
 0x109   :  { %1961 = vmatpush1.bf16.msra.mxu1 %v3883_v18  ;;  %2711 = vmatprep.subr.bf16.mxu0 %v3960_v22 }
 0x10a   :  { %1962 = vmatprep.subr.bf16.mxu1 %v3888_v25 }
 0x10c   :  { %1894 = vmatmul.mubr.bf16.gmra.mrb[40].mxu1 %v4240_v60  ;;  %v3895_v60 = vld [vmem:[#allocation6 + $0x4e8] ss:$16 sps:$4 sm:$0xff]   ;;  %2712 = vmatpush1.bf16.msra.mxu0 %v3958_v30 }
 0x10d   :  { %1963 = vmatpush1.bf16.msra.mxu1 %v3886_v44  ;;  %1903 = vmatprep.mubr.bf16.mxu1 %v4244_v3  ;;  %v3900_v3 = vld [vmem:[#allocation6 + $0x50c] ss:$16 sps:$4 sm:$0xff]  }
 0x10e   :  { %1964 = vmatprep.subr.bf16.mxu1 %v3891_v9  ;;  %2713 = vmatprep.subr.bf16.mxu0 %v3963_v13 }
 0x110   :  { %2714 = vmatpush1.bf16.msra.mxu0 %v3961_v34 }
 0x111   :  { %1965 = vmatpush1.bf16.msra.mxu1 %v3889_v38  ;;  %2715 = vmatprep.subr.bf16.mxu0 %v3966_v35 }
 0x112   :  { %1966 = vmatprep.subr.bf16.mxu1 %v3894_v45 }
 0x114   :  { %1904 = vmatmul.mubr.bf16.gmra.mrb[44].mxu1 %v4252_v16  ;;  %v3901_v16 = vld [vmem:[#allocation6 + $0x528] ss:$16 sps:$4 sm:$0xff]   ;;  %2716 = vmatpush1.bf16.msra.mxu0 %v3964_v43 }
 0x115   :  { %1967 = vmatpush1.bf16.msra.mxu1 %v3892_v28  ;;  %1913 = vmatprep.mubr.bf16.mxu1 %v4256_v27  ;;  %v3906_v27 = vld [vmem:[#allocation6 + $0x54c] ss:$16 sps:$4 sm:$0xff]  }
 0x116   :  { %1968 = vmatprep.subr.bf16.mxu1 %v3897_v2  ;;  %2717 = vmatprep.subr.bf16.mxu0 %v3969_v32 }
 0x118   :  { %2718 = vmatpush1.bf16.msra.mxu0 %v3967_v47 }
 0x119   :  { %1969 = vmatpush1.bf16.msra.mxu1 %v3895_v60  ;;  %2800 = vmatprep.subr.bf16.mxu0 %v3972_v57  ;;  %v3970_v57 = vld [vmem:[#allocation8 + $0x100] ss:$8 sps:$4 sm:$0xff]  }
 0x11a   :  { %1970 = vmatprep.subr.bf16.mxu1 %v3900_v3 }
 0x11c   :  { %1914 = vmatmul.mubr.bf16.gmra.mrb[48].mxu1 %v4264_v42  ;;  %v3912_v42 = vld [vmem:[#allocation6 + $0x58c] ss:$16 sps:$4 sm:$0xff]  }
 0x11d   :  { %1971 = vmatpush1.bf16.msra.mxu1 %v3898_v15  ;;  %1923 = vmatprep.mubr.bf16.mxu1 %v4268_v51  ;;  %v3910_v51 = vld [vmem:[#allocation6 + $0x588] ss:$16 sps:$4 sm:$0xff]  }
 0x11e   :  { %1972 = vmatprep.subr.bf16.mxu1 %v3903_v39 }
 0x121   :  { %1973 = vmatpush1.bf16.msra.mxu1 %v3901_v16 }
 0x122   :  { %1974 = vmatprep.subr.bf16.mxu1 %v3906_v27 }
 0x124   :  { %1924 = vmatmul.mubr.bf16.gmra.mrb[52].mxu1 %v4276_v6  ;;  %v3916_v6 = vld [vmem:[#allocation6 + $0x5c8] ss:$16 sps:$4 sm:$0xff]  }
 0x125   :  { %1975 = vmatpush1.bf16.msra.mxu1 %v3904_v49  ;;  %1933 = vmatprep.mubr.bf16.mxu1 %v4280_v14  ;;  %v3919_v14 = vld [vmem:[#allocation6 + $0x5e8] ss:$16 sps:$4 sm:$0xff]  }
 0x126   :  { %1976 = vmatprep.subr.bf16.mxu1 %v3909_v17 }
 0x129   :  { %1977 = vmatpush1.bf16.msra.mxu1 %v3907_v26 }
 0x12a   :  { %1978 = vmatprep.subr.bf16.mxu1 %v3912_v42 }
 0x12c   :  { %1934 = vmatmul.mubr.bf16.gmra.mrb[56].mxu1 %v4288_v33 }
 0x12d   :  { %1979 = vmatpush1.bf16.msra.mxu1 %v3910_v51  ;;  %1943 = vmatprep.mubr.bf16.mxu1 %v4292_v48 }
 0x12e   :  { %1980 = vmatprep.subr.bf16.mxu1 %v3915_v52 }
 0x131   :  { %1981 = vmatpush1.bf16.msra.mxu1 %v3913_v53 }
 0x132   :  { %1982 = vmatprep.subr.bf16.mxu1 %v3918_v56 }
 0x134   :  { %1944 = vmatmul.mubr.bf16.gmra.mrb[60].mxu1 %v4300_v63 }
 0x135   :  { %1983 = vmatpush1.bf16.msra.mxu1 %v3916_v6  ;;  %1986 = vmatprep.mubr.bf16.mxu1 %v4302_v11 }
 0x136   :  { %1984 = vmatprep.subr.bf16.mxu1 %v3921_v62 }
 0x139   :  { %1985 = vmatpush1.bf16.msra.mxu1 %v3919_v14 }
 0x13c   :  { %1987 = vmatmul.mubr.bf16.vlgmr.msra.gmra.mrb[32].mxu1 %v4308_v23 }
 0x13d   :  { %1996 = vmatprep.mubr.bf16.mxu1 %v4310_v29 }
 0x144   :  { %1997 = vmatmul.mubr.bf16.gmra.mrb[36].mxu1 %v4316_v40 }
 0x145   :  { %2006 = vmatprep.mubr.bf16.mxu1 %v4318_v46 }
 0x14c   :  { %2007 = vmatmul.mubr.bf16.gmra.mrb[40].mxu1 %v4324_v58 }
 0x14d   :  { %2016 = vmatprep.mubr.bf16.mxu1 %v4326_v0 }
 0x14f   :  { %v1423_v33 = vpop.f32.mrb[0].mxu1 }
 0x150   :  { %v1425_v48 = vpop.f32.mrb[1].mxu1 }
 0x151   :  { %v1427_v63 = vpop.f32.mrb[2].mxu1 }
 0x152   :  { %v1429_v55 = vpop.f32.mrb[3].mxu1 }
 0x154   :  { %2017 = vmatmul.mubr.bf16.gmra.mrb[44].mxu1 %v4332_v10 }
 0x155   :  { %2026 = vmatprep.mubr.bf16.mxu1 %v4334_v19 }
 0x157   :  { %v1433_v11 = vpop.f32.mrb[4].mxu1 }
 0x158   :  { %v4393_v23 = vpop.f32.mrb[5].mxu1 }
 0x159   :  { %v4395_v29 = vpop.f32.mrb[6].mxu1 }
 0x15a   :  { %v4397_v40 = vpop.f32.mrb[7].mxu1 }
 0x15c   :  { %2027 = vmatmul.mubr.bf16.gmra.mrb[48].mxu1 %v4340_v31 }
 0x15d   :  { %2036 = vmatprep.mubr.bf16.mxu1 %v4342_v36 }
 0x15f   :  { %v4401_v46 = vpop.f32.mrb[8].mxu1 }
 0x160   :  { %v4403_v58 = vpop.f32.mrb[9].mxu1 }
 0x161   :  { %v4405_v0 = vpop.f32.mrb[10].mxu1 }
 0x162   :  { %v4407_v10 = vpop.f32.mrb[11].mxu1 }
 0x164   :  { %2037 = vmatmul.mubr.bf16.gmra.mrb[52].mxu1 %v4348_v24 }
 0x165   :  { %2046 = vmatprep.mubr.bf16.mxu1 %v4350_v61 }
 0x167   :  { %v4411_v19 = vpop.f32.mrb[12].mxu1 }
 0x168   :  { %v4413_v41 = vpop.f32.mrb[13].mxu1 }
 0x169   :  { %v4415_v1 = vpop.f32.mrb[14].mxu1 }
 0x16a   :  { %v4417_v31 = vpop.f32.mrb[15].mxu1 }
 0x16c   :  { %2047 = vmatmul.mubr.bf16.gmra.mrb[56].mxu1 %v4356_v20  ;;  %v409_v20 = vlaneseq }
 0x16d   :  { %2056 = vmatprep.mubr.bf16.mxu1 %v4358_v59 }
 0x16e   :  { %v4444_v44 = vshrl.u32 %v409_v20, 7 }
 0x16f   :  { %v4421_v36 = vpop.f32.mrb[16].mxu1 }
 0x170   :  { %v4423_v4 = vpop.f32.mrb[17].mxu1  ;;  %v415_v21 = vsub.s32 1, %v4444_v44 }
 0x171   :  { %v4425_v37 = vpop.f32.mrb[18].mxu1 }
 0x172   :  { %v4427_v24 = vpop.f32.mrb[19].mxu1  ;;  %v4472_v2 = vrot.slane %v4454_v12, %v415_v21 }
 0x174   :  { %2057 = vmatmul.mubr.bf16.gmra.mrb[60].mxu1 %v4364_v54  ;;  %v4449_v54 = vsub.s32 0, %v4444_v44  ;;  %v1426_v13 = vadd.f32 %v1425_v48, %v4472_v2  ;;  %v1430_v15 = vadd.f32 %v1429_v55, %v4472_v2  ;;  %v1436_v53 = vadd.f32 %v4393_v23, %v4472_v2 }
 0x175   :  { %v1440_v20 = vadd.f32 %v4397_v40, %v4472_v2  ;;  %v3978_v40 = vld [vmem:[#allocation8 + $0x124] ss:$8 sps:$4 sm:$0xff]  }
 0x176   :  { %v4465_v22 = vrot.slane %v4454_v12, %v4449_v54 }
 0x177   :  { %v4430_v61 = vpop.f32.mrb[20].mxu1 }
 0x178   :  { %v4432_v7 = vpop.f32.mrb[21].mxu1  ;;  %v1424_v30 = vadd.f32 %v1423_v33, %v4465_v22  ;;  %v1428_v3 = vadd.f32 %v1427_v63, %v4465_v22  ;;  %v1434_v42 = vadd.f32 %v1433_v11, %v4465_v22  ;;  %v1438_v33 = vadd.f32 %v4395_v29, %v4465_v22 }
 0x179   :  { %v4434_v18 = vpop.f32.mrb[22].mxu1 }
 0x17a   :  { %v4436_v25 = vpop.f32.mrb[23].mxu1 }
 0x17f   :  { %v4438_v59 = vpop.f32.mrb[24].mxu1 }
 0x180   :  { %v4440_v50 = vpop.f32.mrb[25].mxu1 }
 0x181   :  { %v4442_v8 = vpop.f32.mrb[26].mxu1 }
 0x182   :  { %v4446_v9 = vpop.f32.mrb[27].mxu1 }
 0x187   :  { %v4457_v38 = vpop.f32.mrb[28].mxu1 }
 0x188   :  { %v4459_v45 = vpop.f32.mrb[29].mxu1 }
 0x189   :  { %v4461_v5 = vpop.f32.mrb[30].mxu1 }
 0x18a   :  { %v4467_v28 = vpop.f32.mrb[31].mxu1 }
 0x190   :  { %v1649_v60 = vpop.f32.mrb[0].mxu0 }
 0x191   :  { %v3367_v34 = vadd.f32 %v1649_v60, %v1424_v30  ;;  %v1651_v35 = vpop.f32.mrb[1].mxu0 }
 0x192   :  { %v3369_v39 = vadd.f32 %v1651_v35, %v1426_v13  ;;  %v1653_v43 = vpop.f32.mrb[2].mxu0  ;;  %v3975_v13 = vld [vmem:[#allocation8 + $0x114] ss:$8 sps:$4 sm:$0xff]  }
 0x193   :  { %v2131_v32 = vmul.f32 0.2, %v3367_v34  ;;  %v3371_v16 = vadd.f32 %v1653_v43, %v1428_v3  ;;  %v1655_v27 = vpop.f32.mrb[3].mxu0  ;;  %vm2067_vm0 = vcmp.gt.f32.partialorder %v3367_v34, 0.0  ;;  %v1444_v43 = vadd.f32 %v4401_v46, %v4465_v22 }
 0x194   :  { %v2132_v47 = vmul.f32 0.2, %v3369_v39  ;;  %v3373_v49 = vadd.f32 %v1655_v27, %v1430_v15  ;;  %vm2068_vm1 = vcmp.gt.f32.partialorder %v3369_v39, 0.0  ;;  %v3973_v15 = vld [vmem:[#allocation8 + $0x110] ss:$8 sps:$4 sm:$0xff]   ;;  %v1446_v27 = vadd.f32 %v4403_v58, %v4472_v2 }
 0x195   :  { %vm2071_vm2 = vcmp.gt.f32.partialorder %v3371_v16, 0.0  ;;  %v2135_v17 = vmul.f32 0.2, %v3371_v16  ;;  %v2195_v51 = vsel %vm2067_vm0, %v3367_v34, %v2131_v32  ;;  %v1450_v46 = vadd.f32 %v4407_v10, %v4472_v2  ;;  %v3984_v10 = vld [vmem:[#allocation8 + $0x144] ss:$8 sps:$4 sm:$0xff]  }
 0x196   :  { %vm2072_vm3 = vcmp.gt.f32.partialorder %v3373_v49, 0.0  ;;  %v2136_v26 = vmul.f32 0.2, %v3373_v49  ;;  %v2196_v62 = vsel %vm2068_vm1, %v3369_v39, %v2132_v47 }
 0x197   :  { %v2199_v52 = vsel %vm2071_vm2, %v3371_v16, %v2135_v17 }
 0x198   :  { %v2259_v56 = vpack.c.bf16 %v2199_v52, %v2195_v51  ;;  %v1659_v6 = vpop.f32.mrb[4].mxu0  ;;  %v2200_v14 = vsel %vm2072_vm3, %v3373_v49, %v2136_v26 }
 0x199   :  { %v3375_v48 = vadd.f32 %v1659_v6, %v1434_v42  ;;  %v1661_v63 = vpop.f32.mrb[5].mxu0  ;;  %v2260_v55 = vpack.c.bf16 %v2200_v14, %v2196_v62  ;;  %v1448_v42 = vadd.f32 %v4405_v0, %v4465_v22  ;;  %v3981_v14 = vld [vmem:[#allocation8 + $0x134] ss:$8 sps:$4 sm:$0xff]  }
 0x19a   :  { %v3377_v11 = vadd.f32 %v1661_v63, %v1436_v53  ;;  %v1663_v30 = vpop.f32.mrb[6].mxu0 }
 0x19b   :  { %v2139_v60 = vmul.f32 0.2, %v3375_v48  ;;  %v3379_v3 = vadd.f32 %v1663_v30, %v1438_v33  ;;  %v1665_v23 = vpop.f32.mrb[7].mxu0  ;;  %2719 = vmatprep.mubr.bf16.mxu0 %v2260_v55  ;;  %vm2075_vm4 = vcmp.gt.f32.partialorder %v3375_v48, 0.0 }
 0x19c   :  { %v2140_v34 = vmul.f32 0.2, %v3377_v11  ;;  %v3381_v35 = vadd.f32 %v1665_v23, %v1440_v20  ;;  %2720 = vmatmul.mubr.bf16.vlgmr.msra.gmra.mrb[32].mxu0 %v2259_v56  ;;  %vm2076_vm5 = vcmp.gt.f32.partialorder %v3377_v11, 0.0  ;;  %v3976_v56 = vld [vmem:[#allocation8 + $0x120] ss:$8 sps:$4 sm:$0xff]  }
 0x19d   :  { %vm2079_vm6 = vcmp.gt.f32.partialorder %v3379_v3, 0.0  ;;  %v2143_v29 = vmul.f32 0.2, %v3379_v3  ;;  %2801 = vmatpush1.bf16.msra.mxu0 %v3970_v57  ;;  %v2203_v32 = vsel %vm2075_vm4, %v3375_v48, %v2139_v60  ;;  %v3979_v57 = vld [vmem:[#allocation8 + $0x130] ss:$8 sps:$4 sm:$0xff]   ;;  %v1456_v60 = vadd.f32 %v4413_v41, %v4472_v2 }
 0x19e   :  { %vm2080_vm7 = vcmp.gt.f32.partialorder %v3381_v35, 0.0  ;;  %v2144_v39 = vmul.f32 0.2, %v3381_v35  ;;  %2802 = vmatprep.subr.bf16.mxu0 %v3975_v13  ;;  %v2204_v49 = vsel %vm2076_vm5, %v3377_v11, %v2140_v34  ;;  %v1454_v11 = vadd.f32 %v4411_v19, %v4465_v22 }
 0x19f   :  { %v2207_v16 = vsel %vm2079_vm6, %v3379_v3, %v2143_v29  ;;  %v1458_v29 = vadd.f32 %v4415_v1, %v4465_v22  ;;  %v1460_v19 = vadd.f32 %v4417_v31, %v4472_v2  ;;  %v3990_v31 = vld [vmem:[#allocation8 + $0x164] ss:$8 sps:$4 sm:$0xff]  }
 0x1a0   :  { %v1669_v47 = vpop.f32.mrb[8].mxu0  ;;  %v2208_v17 = vsel %vm2080_vm7, %v3381_v35, %v2144_v39  ;;  %v2263_v26 = vpack.c.bf16 %v2207_v16, %v2203_v32 }
 0x1a1   :  { %v3383_v51 = vadd.f32 %v1669_v47, %v1444_v43  ;;  %v1671_v52 = vpop.f32.mrb[9].mxu0  ;;  %v2264_v53 = vpack.c.bf16 %v2208_v17, %v2204_v49  ;;  %2803 = vmatpush1.bf16.msra.mxu0 %v3973_v15  ;;  %v3982_v43 = vld [vmem:[#allocation8 + $0x140] ss:$8 sps:$4 sm:$0xff]  }
 0x1a2   :  { %v3385_v6 = vadd.f32 %v1671_v52, %v1446_v27  ;;  %v1673_v62 = vpop.f32.mrb[10].mxu0  ;;  %2804 = vmatprep.subr.bf16.mxu0 %v3978_v40  ;;  %v3987_v27 = vld [vmem:[#allocation8 + $0x154] ss:$8 sps:$4 sm:$0xff]   ;;  %v1464_v52 = vadd.f32 %v4421_v36, %v4465_v22  ;;  %v1470_v36 = vadd.f32 %v4427_v24, %v4472_v2  ;;  %v3996_v24 = vld [vmem:[#allocation8 + $0x184] ss:$8 sps:$4 sm:$0xff]  }
 0x1a3   :  { %v2147_v58 = vmul.f32 0.2, %v3383_v51  ;;  %v3387_v33 = vadd.f32 %v1673_v62, %v1448_v42  ;;  %v1675_v48 = vpop.f32.mrb[11].mxu0  ;;  %2729 = vmatprep.mubr.bf16.mxu0 %v2264_v53  ;;  %vm2083_vm8 = vcmp.gt.f32.partialorder %v3383_v51, 0.0  ;;  %v3985_v42 = vld [vmem:[#allocation8 + $0x150] ss:$8 sps:$4 sm:$0xff]  }
 0x1a4   :  { %v2148_v63 = vmul.f32 0.2, %v3385_v6  ;;  %v3389_v55 = vadd.f32 %v1675_v48, %v1450_v46  ;;  %2730 = vmatmul.mubr.bf16.gmra.mrb[36].mxu0 %v2263_v26  ;;  %vm2084_vm9 = vcmp.gt.f32.partialorder %v3385_v6, 0.0  ;;  %v1466_v46 = vadd.f32 %v4423_v4, %v4472_v2 }
 0x1a5   :  { %vm2087_vm10 = vcmp.gt.f32.partialorder %v3387_v33, 0.0  ;;  %v2151_v0 = vmul.f32 0.2, %v3387_v33  ;;  %2805 = vmatpush1.bf16.msra.mxu0 %v3976_v56  ;;  %v2211_v30 = vsel %vm2083_vm8, %v3383_v51, %v2147_v58 }
 0x1a6   :  { %vm2088_vm11 = vcmp.gt.f32.partialorder %v3389_v55, 0.0  ;;  %v2152_v20 = vmul.f32 0.2, %v3389_v55  ;;  %2806 = vmatprep.subr.bf16.mxu0 %v3981_v14  ;;  %v2212_v23 = vsel %vm2084_vm9, %v3385_v6, %v2148_v63 }
 0x1a7   :  { %v2215_v13 = vsel %vm2087_vm10, %v3387_v33, %v2151_v0  ;;  %v1468_v33 = vadd.f32 %v4425_v37, %v4465_v22  ;;  %v3988_v0 = vld [vmem:[#allocation8 + $0x160] ss:$8 sps:$4 sm:$0xff]  }
 0x1a8   :  { %v1679_v3 = vpop.f32.mrb[12].mxu0  ;;  %v2216_v34 = vsel %vm2088_vm11, %v3389_v55, %v2152_v20  ;;  %v2267_v35 = vpack.c.bf16 %v2215_v13, %v2211_v30 }
 0x1a9   :  { %v3391_v15 = vadd.f32 %v1679_v3, %v1454_v11  ;;  %v1681_v39 = vpop.f32.mrb[13].mxu0  ;;  %v2268_v40 = vpack.c.bf16 %v2216_v34, %v2212_v23  ;;  %2807 = vmatpush1.bf16.msra.mxu0 %v3979_v57  ;;  %v3991_v3 = vld [vmem:[#allocation8 + $0x170] ss:$8 sps:$4 sm:$0xff]   ;;  %v1474_v34 = vadd.f32 %v4430_v61, %v4465_v22  ;;  %v1480_v61 = vadd.f32 %v4436_v25, %v4472_v2  ;;  %v4002_v25 = vld [vmem:[#allocation8 + $0x1a4] ss:$8 sps:$4 sm:$0xff]  }
 0x1aa   :  { %v3393_v32 = vadd.f32 %v1681_v39, %v1456_v60  ;;  %v1683_v16 = vpop.f32.mrb[14].mxu0  ;;  %2808 = vmatprep.subr.bf16.mxu0 %v3984_v10  ;;  %v3993_v10 = vld [vmem:[#allocation8 + $0x174] ss:$8 sps:$4 sm:$0xff]  }
 0x1ab   :  { %v2155_v41 = vmul.f32 0.2, %v3391_v15  ;;  %v3395_v47 = vadd.f32 %v1683_v16, %v1458_v29  ;;  %v1685_v49 = vpop.f32.mrb[15].mxu0  ;;  %2739 = vmatprep.mubr.bf16.mxu0 %v2268_v40  ;;  %vm2091_vm12 = vcmp.gt.f32.partialorder %v3391_v15, 0.0 }
 0x1ac   :  { %v2156_v17 = vmul.f32 0.2, %v3393_v32  ;;  %v3397_v26 = vadd.f32 %v1685_v49, %v1460_v19  ;;  %2740 = vmatmul.mubr.bf16.gmra.mrb[40].mxu0 %v2267_v35  ;;  %vm2092_vm13 = vcmp.gt.f32.partialorder %v3393_v32, 0.0 }
 0x1ad   :  { %vm2095_vm14 = vcmp.gt.f32.partialorder %v3395_v47, 0.0  ;;  %v2159_v1 = vmul.f32 0.2, %v3395_v47  ;;  %2809 = vmatpush1.bf16.msra.mxu0 %v3982_v43  ;;  %v2219_v53 = vsel %vm2091_vm12, %v3391_v15, %v2155_v41  ;;  %v1476_v15 = vadd.f32 %v4432_v7, %v4472_v2 }
 0x1ae   :  { %vm2096_vm15 = vcmp.gt.f32.partialorder %v3397_v26, 0.0  ;;  %v2160_v51 = vmul.f32 0.2, %v3397_v26  ;;  %2810 = vmatprep.subr.bf16.mxu0 %v3987_v27  ;;  %v2220_v62 = vsel %vm2092_vm13, %v3393_v32, %v2156_v17  ;;  %v1478_v32 = vadd.f32 %v4434_v18, %v4465_v22 }
 0x1af   :  { %v2223_v56 = vsel %vm2095_vm14, %v3395_v47, %v2159_v1  ;;  %v3994_v47 = vld [vmem:[#allocation8 + $0x180] ss:$8 sps:$4 sm:$0xff]  }
 0x1b0   :  { %v1689_v6 = vpop.f32.mrb[16].mxu0  ;;  %v2224_v14 = vsel %vm2096_vm15, %v3397_v26, %v2160_v51  ;;  %v2271_v58 = vpack.c.bf16 %v2223_v56, %v2219_v53  ;;  %v3999_v26 = vld [vmem:[#allocation8 + $0x194] ss:$8 sps:$4 sm:$0xff]   ;;  %v1484_v56 = vadd.f32 %v4438_v59, %v4465_v22  ;;  %v1490_v59 = vadd.f32 %v4446_v9, %v4472_v2  ;;  %v4008_v9 = vld [vmem:[#allocation8 + $0x1c4] ss:$8 sps:$4 sm:$0xff]  }
 0x1b1   :  { %v3399_v48 = vadd.f32 %v1689_v6, %v1464_v52  ;;  %v1691_v63 = vpop.f32.mrb[17].mxu0  ;;  %v2272_v55 = vpack.c.bf16 %v2224_v14, %v2220_v62  ;;  %2811 = vmatpush1.bf16.msra.mxu0 %v3985_v42  ;;  %v3997_v52 = vld [vmem:[#allocation8 + $0x190] ss:$8 sps:$4 sm:$0xff]   ;;  %v1486_v62 = vadd.f32 %v4440_v50, %v4472_v2 }
 0x1b2   :  { %v3401_v57 = vadd.f32 %v1691_v63, %v1466_v46  ;;  %v1693_v20 = vpop.f32.mrb[18].mxu0  ;;  %2812 = vmatprep.subr.bf16.mxu0 %v3990_v31  ;;  %v1488_v63 = vadd.f32 %v4442_v8, %v4465_v22 }
 0x1b3   :  { %v2163_v4 = vmul.f32 0.2, %v3399_v48  ;;  %v3403_v11 = vadd.f32 %v1693_v20, %v1468_v33  ;;  %v1695_v30 = vpop.f32.mrb[19].mxu0  ;;  %2749 = vmatprep.mubr.bf16.mxu0 %v2272_v55  ;;  %vm2099_vm0 = vcmp.gt.f32.partialorder %v3399_v48, 0.0 }
 0x1b4   :  { %v2164_v13 = vmul.f32 0.2, %v3401_v57  ;;  %v3405_v60 = vadd.f32 %v1695_v30, %v1470_v36  ;;  %2750 = vmatmul.mubr.bf16.gmra.mrb[44].mxu0 %v2271_v58  ;;  %vm2100_vm1 = vcmp.gt.f32.partialorder %v3401_v57, 0.0 }
 0x1b5   :  { %vm2103_vm2 = vcmp.gt.f32.partialorder %v3403_v11, 0.0  ;;  %v2167_v37 = vmul.f32 0.2, %v3403_v11  ;;  %2813 = vmatpush1.bf16.msra.mxu0 %v3988_v0  ;;  %v2227_v35 = vsel %vm2099_vm0, %v3399_v48, %v2163_v4  ;;  %v4005_v4 = vld [vmem:[#allocation8 + $0x1b4] ss:$8 sps:$4 sm:$0xff]  }
 0x1b6   :  { %vm2104_vm3 = vcmp.gt.f32.partialorder %v3405_v60, 0.0  ;;  %v2168_v23 = vmul.f32 0.2, %v3405_v60  ;;  %2814 = vmatprep.subr.bf16.mxu0 %v3993_v10  ;;  %v2228_v40 = vsel %vm2100_vm1, %v3401_v57, %v2164_v13  ;;  %v4000_v57 = vld [vmem:[#allocation8 + $0x1a0] ss:$8 sps:$4 sm:$0xff]  }
 0x1b7   :  { %v2231_v29 = vsel %vm2103_vm2, %v3403_v11, %v2167_v37  ;;  %v4003_v37 = vld [vmem:[#allocation8 + $0x1b0] ss:$8 sps:$4 sm:$0xff]  }
 0x1b8   :  { %v1699_v39 = vpop.f32.mrb[20].mxu0  ;;  %v2232_v43 = vsel %vm2104_vm3, %v3405_v60, %v2168_v23  ;;  %v2275_v19 = vpack.c.bf16 %v2231_v29, %v2227_v35  ;;  %v1494_v23 = vadd.f32 %v4457_v38, %v4465_v22  ;;  %v1496_v35 = vadd.f32 %v4459_v45, %v4472_v2 }
 0x1b9   :  { %v3407_v16 = vadd.f32 %v1699_v39, %v1474_v34  ;;  %v1701_v27 = vpop.f32.mrb[21].mxu0  ;;  %v2276_v41 = vpack.c.bf16 %v2232_v43, %v2228_v40  ;;  %2815 = vmatpush1.bf16.msra.mxu0 %v3991_v3  ;;  %v1498_v43 = vadd.f32 %v4461_v5, %v4465_v22  ;;  %v1500_v38 = vadd.f32 %v4467_v28, %v4472_v2  ;;  %v4009_v22 = vld [vmem:[#allocation8 + $0x1d0] ss:$8 sps:$4 sm:$0xff]   ;;  %v4014_v28 = vld [vmem:[#allocation8 + $0x1e4] ss:$8 sps:$4 sm:$0xff]  }
 0x1ba   :  { %v3409_v49 = vadd.f32 %v1701_v27, %v1476_v15  ;;  %v1703_v17 = vpop.f32.mrb[22].mxu0  ;;  %2816 = vmatprep.subr.bf16.mxu0 %v3996_v24  ;;  %v4006_v27 = vld [vmem:[#allocation8 + $0x1c0] ss:$8 sps:$4 sm:$0xff]  }
 0x1bb   :  { %v2171_v7 = vmul.f32 0.2, %v3407_v16  ;;  %v3411_v1 = vadd.f32 %v1703_v17, %v1478_v32  ;;  %v1705_v42 = vpop.f32.mrb[23].mxu0  ;;  %2759 = vmatprep.mubr.bf16.mxu0 %v2276_v41  ;;  %vm2107_vm4 = vcmp.gt.f32.partialorder %v3407_v16, 0.0 }
 0x1bc   :  { %v2172_v51 = vmul.f32 0.2, %v3409_v49  ;;  %v3413_v31 = vadd.f32 %v1705_v42, %v1480_v61  ;;  %2760 = vmatmul.mubr.bf16.gmra.mrb[48].mxu0 %v2275_v19  ;;  %vm2108_vm5 = vcmp.gt.f32.partialorder %v3409_v49, 0.0  ;;  %v4011_v61 = vld [vmem:[#allocation8 + $0x1d4] ss:$8 sps:$4 sm:$0xff]  }
 0x1bd   :  { %vm2111_vm6 = vcmp.gt.f32.partialorder %v3411_v1, 0.0  ;;  %v2175_v18 = vmul.f32 0.2, %v3411_v1  ;;  %2817 = vmatpush1.bf16.msra.mxu0 %v3994_v47  ;;  %v2235_v46 = vsel %vm2107_vm4, %v3407_v16, %v2171_v7 }
 0x1be   :  { %vm2112_vm7 = vcmp.gt.f32.partialorder %v3413_v31, 0.0  ;;  %v2176_v53 = vmul.f32 0.2, %v3413_v31  ;;  %2818 = vmatprep.subr.bf16.mxu0 %v3999_v26  ;;  %v2236_v58 = vsel %vm2108_vm5, %v3409_v49, %v2172_v51 }
 0x1bf   :  { %v2239_v6 = vsel %vm2111_vm6, %v3411_v1, %v2175_v18 }
 0x1c0   :  { %v1709_v14 = vpop.f32.mrb[24].mxu0  ;;  %v2240_v33 = vsel %vm2112_vm7, %v3413_v31, %v2176_v53  ;;  %v2279_v48 = vpack.c.bf16 %v2239_v6, %v2235_v46  ;;  %v4012_v53 = vld [vmem:[#allocation8 + $0x1e0] ss:$8 sps:$4 sm:$0xff]   ;;  %v419_v46 = vsub.s32 2, %v4444_v44  ;;  %v423_v6 = vsub.s32 3, %v4444_v44 }
 0x1c1   :  { %v3415_v55 = vadd.f32 %v1709_v14, %v1484_v56  ;;  %v1711_v0 = vpop.f32.mrb[25].mxu0  ;;  %v2280_v36 = vpack.c.bf16 %v2240_v33, %v2236_v58  ;;  %2819 = vmatpush1.bf16.msra.mxu0 %v3997_v52  ;;  %v4015_v56 = vld [vmem:[#allocation8 + $0x1f0] ss:$8 sps:$4 sm:$0xff]  }
 0x1c2   :  { %v3417_v20 = vadd.f32 %v1711_v0, %v1486_v62  ;;  %v1713_v10 = vpop.f32.mrb[26].mxu0  ;;  %2820 = vmatprep.subr.bf16.mxu0 %v4002_v25  ;;  %v4017_v25 = vld [vmem:[#allocation8 + $0x1f4] ss:$8 sps:$4 sm:$0xff]   ;;  %v4536_v62 = vrot.slane %v4454_v12, %v419_v46  ;;  %v4539_v14 = vrot.slane %v4454_v12, %v423_v6 }
 0x1c3   :  { %v2179_v50 = vmul.f32 0.2, %v3415_v55  ;;  %v3419_v11 = vadd.f32 %v1713_v10, %v1488_v63  ;;  %v1715_v30 = vpop.f32.mrb[27].mxu0  ;;  %2769 = vmatprep.mubr.bf16.mxu0 %v2280_v36  ;;  %vm2115_vm8 = vcmp.gt.f32.partialorder %v3415_v55, 0.0 }
 0x1c4   :  { %v2180_v13 = vmul.f32 0.2, %v3417_v20  ;;  %v3421_v60 = vadd.f32 %v1715_v30, %v1490_v59  ;;  %2770 = vmatmul.mubr.bf16.gmra.mrb[52].mxu0 %v2279_v48  ;;  %vm2116_vm9 = vcmp.gt.f32.partialorder %v3417_v20, 0.0 }
 0x1c5   :  { %vm2119_vm10 = vcmp.gt.f32.partialorder %v3419_v11, 0.0  ;;  %v2183_v8 = vmul.f32 0.2, %v3419_v11  ;;  %2821 = vmatpush1.bf16.msra.mxu0 %v4000_v57  ;;  %v2243_v24 = vsel %vm2115_vm8, %v3415_v55, %v2179_v50 }
 0x1c6   :  { %vm2120_vm11 = vcmp.gt.f32.partialorder %v3421_v60, 0.0  ;;  %v2184_v3 = vmul.f32 0.2, %v3421_v60  ;;  %2822 = vmatprep.subr.bf16.mxu0 %v4005_v4  ;;  %v2244_v15 = vsel %vm2116_vm9, %v3417_v20, %v2180_v13 }
 0x1c7   :  { %v2247_v34 = vsel %vm2119_vm10, %v3419_v11, %v2183_v8 }
 0x1c8   :  { %v1719_v29 = vpop.f32.mrb[28].mxu0  ;;  %v2248_v39 = vsel %vm2120_vm11, %v3421_v60, %v2184_v3  ;;  %v2283_v40 = vpack.c.bf16 %v2247_v34, %v2243_v24 }
 0x1c9   :  { %v3423_v19 = vadd.f32 %v1719_v29, %v1494_v23  ;;  %v1721_v32 = vpop.f32.mrb[29].mxu0  ;;  %v2284_v16 = vpack.c.bf16 %v2248_v39, %v2244_v15  ;;  %2823 = vmatpush1.bf16.msra.mxu0 %v4003_v37 }
 0x1ca   :  { %v3425_v41 = vadd.f32 %v1721_v32, %v1496_v35  ;;  %v1723_v47 = vpop.f32.mrb[30].mxu0  ;;  %2824 = vmatprep.subr.bf16.mxu0 %v4008_v9 }
 0x1cb   :  { %v2187_v45 = vmul.f32 0.2, %v3423_v19  ;;  %v3427_v49 = vadd.f32 %v1723_v47, %v1498_v43  ;;  %v1725_v17 = vpop.f32.mrb[31].mxu0  ;;  %2779 = vmatprep.mubr.bf16.mxu0 %v2284_v16  ;;  %vm2123_vm12 = vcmp.gt.f32.partialorder %v3423_v19, 0.0 }
 0x1cc   :  { %v2188_v26 = vmul.f32 0.2, %v3425_v41  ;;  %v3429_v7 = vadd.f32 %v1725_v17, %v1500_v38  ;;  %2780 = vmatmul.mubr.bf16.gmra.mrb[56].mxu0 %v2283_v40  ;;  %vm2124_vm13 = vcmp.gt.f32.partialorder %v3425_v41, 0.0 }
 0x1cd   :  { %vm2127_vm14 = vcmp.gt.f32.partialorder %v3427_v49, 0.0  ;;  %v2191_v5 = vmul.f32 0.2, %v3427_v49  ;;  %2825 = vmatpush1.bf16.msra.mxu0 %v4006_v27  ;;  %v2251_v2 = vsel %vm2123_vm12, %v3423_v19, %v2187_v45 }
 0x1ce   :  { %vm2128_vm15 = vcmp.gt.f32.partialorder %v3429_v7, 0.0  ;;  %v2192_v1 = vmul.f32 0.2, %v3429_v7  ;;  %2826 = vmatprep.subr.bf16.mxu0 %v4011_v61  ;;  %v2252_v51 = vsel %vm2124_vm13, %v3425_v41, %v2188_v26 }
 0x1cf   :  { %v2255_v42 = vsel %vm2127_vm14, %v3427_v49, %v2191_v5 }
 0x1d0   :  { %v2256_v31 = vsel %vm2128_vm15, %v3429_v7, %v2192_v1  ;;  %v2287_v18 = vpack.c.bf16 %v2255_v42, %v2251_v2 }
 0x1d1   :  { %v2288_v52 = vpack.c.bf16 %v2256_v31, %v2252_v51  ;;  %2827 = vmatpush1.bf16.msra.mxu0 %v4009_v22 }
 0x1d2   :  { %2828 = vmatprep.subr.bf16.mxu0 %v4014_v28 }
 0x1d3   :  { %2789 = vmatprep.mubr.bf16.mxu0 %v2288_v52 }
 0x1d4   :  { %2790 = vmatmul.mubr.bf16.gmra.mrb[60].mxu0 %v2287_v18 }
 0x1d5   :  { %2829 = vmatpush1.bf16.msra.mxu0 %v4012_v53 }
 0x1d6   :  { %2830 = vmatprep.subr.bf16.mxu0 %v4017_v25 }
 0x1d9   :  { %2831 = vmatpush1.bf16.msra.mxu0 %v4015_v56 }
 0x20f   :  { %v1988_v58 = vpop.f32.mrb[32].mxu1 }
 0x210   :  { %v3430_v33 = vadd.f32 %v1988_v58, %v4536_v62  ;;  %v1990_v48 = vpop.f32.mrb[33].mxu1 }
 0x211   :  { %v3431_v63 = vadd.f32 %v1990_v48, %v4539_v14  ;;  %v1992_v55 = vpop.f32.mrb[34].mxu1 }
 0x212   :  { %v2133_v0 = vmul.f32 0.2, %v3430_v33  ;;  %v3432_v36 = vadd.f32 %v1992_v55, %v4536_v62  ;;  %v1994_v57 = vpop.f32.mrb[35].mxu1  ;;  %vm2069_vm0 = vcmp.gt.f32.partialorder %v3430_v33, 0.0 }
 0x213   :  { %v2134_v59 = vmul.f32 0.2, %v3431_v63  ;;  %v3433_v20 = vadd.f32 %v1994_v57, %v4539_v14  ;;  %vm2070_vm1 = vcmp.gt.f32.partialorder %v3431_v63, 0.0 }
 0x214   :  { %vm2073_vm2 = vcmp.gt.f32.partialorder %v3432_v36, 0.0  ;;  %v2137_v10 = vmul.f32 0.2, %v3432_v36  ;;  %v2197_v4 = vsel %vm2069_vm0, %v3430_v33, %v2133_v0 }
 0x215   :  { %vm2074_vm3 = vcmp.gt.f32.partialorder %v3433_v20, 0.0  ;;  %v2138_v12 = vmul.f32 0.2, %v3433_v20  ;;  %v2198_v13 = vsel %vm2070_vm1, %v3431_v63, %v2134_v59 }
 0x216   :  { %v2201_v50 = vsel %vm2073_vm2, %v3432_v36, %v2137_v10 }
 0x217   :  { %v2261_v11 = vpack.c.bf16 %v2201_v50, %v2197_v4  ;;  %v1998_v30 = vpop.f32.mrb[36].mxu1  ;;  %v2202_v60 = vsel %vm2074_vm3, %v3433_v20, %v2138_v12 }
 0x218   :  { %v3434_v8 = vadd.f32 %v1998_v30, %v4536_v62  ;;  %v2000_v37 = vpop.f32.mrb[37].mxu1  ;;  %v2262_v3 = vpack.c.bf16 %v2202_v60, %v2198_v13 }
 0x219   :  { %v3435_v9 = vadd.f32 %v2000_v37, %v4539_v14  ;;  %v2002_v23 = vpop.f32.mrb[38].mxu1 }
 0x21a   :  { %v2141_v24 = vmul.f32 0.2, %v3434_v8  ;;  %v3436_v34 = vadd.f32 %v2002_v23, %v4536_v62  ;;  %v2004_v35 = vpop.f32.mrb[39].mxu1  ;;  %2832 = vmatprep.mubr.bf16.mxu0 %v2262_v3  ;;  %vm2077_vm4 = vcmp.gt.f32.partialorder %v3434_v8, 0.0 }
 0x21b   :  { %v2142_v29 = vmul.f32 0.2, %v3435_v9  ;;  %v3437_v15 = vadd.f32 %v2004_v35, %v4539_v14  ;;  %2833 = vmatmul.mubr.bf16.vlgmr.msra.gmra.mrb[32].mxu0 %v2261_v11  ;;  %vm2078_vm5 = vcmp.gt.f32.partialorder %v3435_v9, 0.0 }
 0x21c   :  { %vm2081_vm6 = vcmp.gt.f32.partialorder %v3436_v34, 0.0  ;;  %v2145_v39 = vmul.f32 0.2, %v3436_v34  ;;  %v2205_v43 = vsel %vm2077_vm4, %v3434_v8, %v2141_v24 }
 0x21d   :  { %vm2082_vm7 = vcmp.gt.f32.partialorder %v3437_v15, 0.0  ;;  %v2146_v40 = vmul.f32 0.2, %v3437_v15  ;;  %v2206_v16 = vsel %vm2078_vm5, %v3435_v9, %v2142_v29 }
 0x21e   :  { %v2209_v19 = vsel %vm2081_vm6, %v3436_v34, %v2145_v39 }
 0x21f   :  { %v2008_v32 = vpop.f32.mrb[40].mxu1  ;;  %v2210_v27 = vsel %vm2082_vm7, %v3437_v15, %v2146_v40  ;;  %v2265_v38 = vpack.c.bf16 %v2209_v19, %v2205_v43 }
 0x220   :  { %v3438_v41 = vadd.f32 %v2008_v32, %v4536_v62  ;;  %v2010_v47 = vpop.f32.mrb[41].mxu1  ;;  %v2266_v61 = vpack.c.bf16 %v2210_v27, %v2206_v16 }
 0x221   :  { %v3439_v45 = vadd.f32 %v2010_v47, %v4539_v14  ;;  %v2012_v49 = vpop.f32.mrb[42].mxu1 }
 0x222   :  { %v2149_v17 = vmul.f32 0.2, %v3438_v41  ;;  %v3440_v26 = vadd.f32 %v2012_v49, %v4536_v62  ;;  %v2014_v7 = vpop.f32.mrb[43].mxu1  ;;  %2842 = vmatprep.mubr.bf16.mxu0 %v2266_v61  ;;  %vm2085_vm8 = vcmp.gt.f32.partialorder %v3438_v41, 0.0 }
 0x223   :  { %v2150_v5 = vmul.f32 0.2, %v3439_v45  ;;  %v3441_v22 = vadd.f32 %v2014_v7, %v4539_v14  ;;  %2843 = vmatmul.mubr.bf16.gmra.mrb[36].mxu0 %v2265_v38  ;;  %vm2086_vm9 = vcmp.gt.f32.partialorder %v3439_v45, 0.0 }
 0x224   :  { %vm2089_vm10 = vcmp.gt.f32.partialorder %v3440_v26, 0.0  ;;  %v2153_v1 = vmul.f32 0.2, %v3440_v26  ;;  %v2213_v2 = vsel %vm2085_vm8, %v3438_v41, %v2149_v17 }
 0x225   :  { %vm2090_vm11 = vcmp.gt.f32.partialorder %v3441_v22, 0.0  ;;  %v2154_v28 = vmul.f32 0.2, %v3441_v22  ;;  %v2214_v31 = vsel %vm2086_vm9, %v3439_v45, %v2150_v5 }
 0x226   :  { %v2217_v42 = vsel %vm2089_vm10, %v3440_v26, %v2153_v1 }
 0x227   :  { %v2018_v51 = vpop.f32.mrb[44].mxu1  ;;  %v2218_v18 = vsel %vm2090_vm11, %v3441_v22, %v2154_v28  ;;  %v2269_v52 = vpack.c.bf16 %v2217_v42, %v2213_v2 }
 0x228   :  { %v3442_v53 = vadd.f32 %v2018_v51, %v4536_v62  ;;  %v2020_v25 = vpop.f32.mrb[45].mxu1  ;;  %v2270_v56 = vpack.c.bf16 %v2218_v18, %v2214_v31 }
 0x229   :  { %v3443_v46 = vadd.f32 %v2020_v25, %v4539_v14  ;;  %v2022_v6 = vpop.f32.mrb[46].mxu1 }
 0x22a   :  { %v2157_v58 = vmul.f32 0.2, %v3442_v53  ;;  %v3444_v33 = vadd.f32 %v2022_v6, %v4536_v62  ;;  %v2024_v48 = vpop.f32.mrb[47].mxu1  ;;  %2852 = vmatprep.mubr.bf16.mxu0 %v2270_v56  ;;  %vm2093_vm12 = vcmp.gt.f32.partialorder %v3442_v53, 0.0 }
 0x22b   :  { %v2158_v63 = vmul.f32 0.2, %v3443_v46  ;;  %v3445_v55 = vadd.f32 %v2024_v48, %v4539_v14  ;;  %2853 = vmatmul.mubr.bf16.gmra.mrb[40].mxu0 %v2269_v52  ;;  %vm2094_vm13 = vcmp.gt.f32.partialorder %v3443_v46, 0.0 }
 0x22c   :  { %vm2097_vm14 = vcmp.gt.f32.partialorder %v3444_v33, 0.0  ;;  %v2161_v0 = vmul.f32 0.2, %v3444_v33  ;;  %v2221_v57 = vsel %vm2093_vm12, %v3442_v53, %v2157_v58 }
 0x22d   :  { %vm2098_vm15 = vcmp.gt.f32.partialorder %v3445_v55, 0.0  ;;  %v2162_v36 = vmul.f32 0.2, %v3445_v55  ;;  %v2222_v10 = vsel %vm2094_vm13, %v3443_v46, %v2158_v63 }
 0x22e   :  { %v2225_v59 = vsel %vm2097_vm14, %v3444_v33, %v2161_v0 }
 0x22f   :  { %v2028_v20 = vpop.f32.mrb[48].mxu1  ;;  %v2226_v12 = vsel %vm2098_vm15, %v3445_v55, %v2162_v36  ;;  %v2273_v4 = vpack.c.bf16 %v2225_v59, %v2221_v57 }
 0x230   :  { %v3446_v50 = vadd.f32 %v2028_v20, %v4536_v62  ;;  %v2030_v11 = vpop.f32.mrb[49].mxu1  ;;  %v2274_v30 = vpack.c.bf16 %v2226_v12, %v2222_v10 }
 0x231   :  { %v3447_v13 = vadd.f32 %v2030_v11, %v4539_v14  ;;  %v2032_v60 = vpop.f32.mrb[50].mxu1 }
 0x232   :  { %v2165_v8 = vmul.f32 0.2, %v3446_v50  ;;  %v3448_v37 = vadd.f32 %v2032_v60, %v4536_v62  ;;  %v2034_v3 = vpop.f32.mrb[51].mxu1  ;;  %2862 = vmatprep.mubr.bf16.mxu0 %v2274_v30  ;;  %vm2101_vm0 = vcmp.gt.f32.partialorder %v3446_v50, 0.0 }
 0x233   :  { %v2166_v9 = vmul.f32 0.2, %v3447_v13  ;;  %v3449_v23 = vadd.f32 %v2034_v3, %v4539_v14  ;;  %2863 = vmatmul.mubr.bf16.gmra.mrb[44].mxu0 %v2273_v4  ;;  %vm2102_vm1 = vcmp.gt.f32.partialorder %v3447_v13, 0.0 }
 0x234   :  { %vm2105_vm2 = vcmp.gt.f32.partialorder %v3448_v37, 0.0  ;;  %v2169_v24 = vmul.f32 0.2, %v3448_v37  ;;  %v2229_v35 = vsel %vm2101_vm0, %v3446_v50, %v2165_v8 }
 0x235   :  { %vm2106_vm3 = vcmp.gt.f32.partialorder %v3449_v23, 0.0  ;;  %v2170_v34 = vmul.f32 0.2, %v3449_v23  ;;  %v2230_v39 = vsel %vm2102_vm1, %v3447_v13, %v2166_v9 }
 0x236   :  { %v2233_v29 = vsel %vm2105_vm2, %v3448_v37, %v2169_v24 }
 0x237   :  { %v2038_v15 = vpop.f32.mrb[52].mxu1  ;;  %v2234_v40 = vsel %vm2106_vm3, %v3449_v23, %v2170_v34  ;;  %v2277_v43 = vpack.c.bf16 %v2233_v29, %v2229_v35  ;;  %v3073_v29 = vld [vmem:[#allocation2] sm:$0x1] }
 0x238   :  { %v3450_v19 = vadd.f32 %v2038_v15, %v4536_v62  ;;  %v2040_v32 = vpop.f32.mrb[53].mxu1  ;;  %v2278_v16 = vpack.c.bf16 %v2234_v40, %v2230_v39  ;;  %v4127_v15 = vmov 0   ;;  %v2355_v39 = vld [vmem:[%s4641_s4] sm:$0x3]  ;;  %s4128_s4 = smov [#allocation9]  }
 0x239   :  { %v3451_v27 = vadd.f32 %v2040_v32, %v4539_v14  ;;  %v2042_v38 = vpop.f32.mrb[54].mxu1  ;;  %3633 = vset.pattern.permute.xlu0 %v4127_v15  ;;  %v4584_v40 = vrot.slane %v2355_v39, %v4449_v54 }
 0x23a   :  { %v2173_v41 = vmul.f32 0.2, %v3450_v19  ;;  %v3452_v47 = vadd.f32 %v2042_v38, %v4536_v62  ;;  %v2044_v61 = vpop.f32.mrb[55].mxu1  ;;  %2872 = vmatprep.mubr.bf16.mxu0 %v2278_v16  ;;  %vm2109_vm4 = vcmp.gt.f32.partialorder %v3450_v19, 0.0  ;;  %3076 = vperm.xlu0 %3633, %v3073_v29  }
 0x23b   :  { %v2174_v45 = vmul.f32 0.2, %v3451_v27  ;;  %v3453_v49 = vadd.f32 %v2044_v61, %v4539_v14  ;;  %2873 = vmatmul.mubr.bf16.gmra.mrb[48].mxu0 %v2277_v43  ;;  %vm2110_vm5 = vcmp.gt.f32.partialorder %v3451_v27, 0.0  ;;  %v4588_v43 = vrot.slane %v2355_v39, %v415_v21 }
 0x23c   :  { %vm2113_vm6 = vcmp.gt.f32.partialorder %v3452_v47, 0.0  ;;  %v2177_v17 = vmul.f32 0.2, %v3452_v47  ;;  %v2237_v7 = vsel %vm2109_vm4, %v3450_v19, %v2173_v41 }
 0x23d   :  { %vm2114_vm7 = vcmp.gt.f32.partialorder %v3453_v49, 0.0  ;;  %v2178_v26 = vmul.f32 0.2, %v3453_v49  ;;  %v2238_v1 = vsel %vm2110_vm5, %v3451_v27, %v2174_v45 }
 0x23e   :  { %v2241_v5 = vsel %vm2113_vm6, %v3452_v47, %v2177_v17 }
 0x23f   :  { %v2048_v22 = vpop.f32.mrb[56].mxu1  ;;  %v2242_v28 = vsel %vm2114_vm7, %v3453_v49, %v2178_v26  ;;  %v2281_v2 = vpack.c.bf16 %v2241_v5, %v2237_v7 }
 0x240   :  { %v3454_v42 = vadd.f32 %v2048_v22, %v4536_v62  ;;  %v2050_v51 = vpop.f32.mrb[57].mxu1  ;;  %v2282_v31 = vpack.c.bf16 %v2242_v28, %v2238_v1 }
 0x241   :  { %v3455_v18 = vadd.f32 %v2050_v51, %v4539_v14  ;;  %v2052_v52 = vpop.f32.mrb[58].mxu1 }
 0x242   :  { %v2181_v53 = vmul.f32 0.2, %v3454_v42  ;;  %v3456_v25 = vadd.f32 %v2052_v52, %v4536_v62  ;;  %v2054_v56 = vpop.f32.mrb[59].mxu1  ;;  %2882 = vmatprep.mubr.bf16.mxu0 %v2282_v31  ;;  %vm2117_vm8 = vcmp.gt.f32.partialorder %v3454_v42, 0.0 }
 0x243   :  { %v2182_v46 = vmul.f32 0.2, %v3455_v18  ;;  %v3457_v6 = vadd.f32 %v2054_v56, %v4539_v14  ;;  %2883 = vmatmul.mubr.bf16.gmra.mrb[52].mxu0 %v2281_v2  ;;  %vm2118_vm9 = vcmp.gt.f32.partialorder %v3455_v18, 0.0 }
 0x244   :  { %vm2121_vm10 = vcmp.gt.f32.partialorder %v3456_v25, 0.0  ;;  %v2185_v58 = vmul.f32 0.2, %v3456_v25  ;;  %v2245_v48 = vsel %vm2117_vm8, %v3454_v42, %v2181_v53 }
 0x245   :  { %vm2122_vm11 = vcmp.gt.f32.partialorder %v3457_v6, 0.0  ;;  %v2186_v33 = vmul.f32 0.2, %v3457_v6  ;;  %v2246_v0 = vsel %vm2118_vm9, %v3455_v18, %v2182_v46 }
 0x246   :  { %v2249_v63 = vsel %vm2121_vm10, %v3456_v25, %v2185_v58 }
 0x247   :  { %v2058_v55 = vpop.f32.mrb[60].mxu1  ;;  %v2250_v36 = vsel %vm2122_vm11, %v3457_v6, %v2186_v33  ;;  %v2285_v57 = vpack.c.bf16 %v2249_v63, %v2245_v48 }
 0x248   :  { %v3458_v59 = vadd.f32 %v2058_v55, %v4536_v62  ;;  %v2060_v20 = vpop.f32.mrb[61].mxu1  ;;  %v2286_v10 = vpack.c.bf16 %v2250_v36, %v2246_v0 }
 0x249   :  { %v3459_v12 = vadd.f32 %v2060_v20, %v4539_v14  ;;  %v2062_v4 = vpop.f32.mrb[62].mxu1 }
 0x24a   :  { %v2189_v50 = vmul.f32 0.2, %v3458_v59  ;;  %v3460_v11 = vadd.f32 %v2062_v4, %v4536_v62  ;;  %v2064_v30 = vpop.f32.mrb[63].mxu1  ;;  %2892 = vmatprep.mubr.bf16.mxu0 %v2286_v10  ;;  %vm2125_vm12 = vcmp.gt.f32.partialorder %v3458_v59, 0.0  ;;  %v4576_v62 = vld [vmem:[%s4642_s5] sm:$0xff]  ;;  %s3097_s5 = sshll.u32 %s4128_s4, 4  ;;  %s3098_s5 = int_to_ptr.vmem [resolvable:$true] %s3097_s5 }
 0x24b   :  { %v2190_v13 = vmul.f32 0.2, %v3459_v12  ;;  %v3461_v60 = vadd.f32 %v2064_v30, %v4539_v14  ;;  %2893 = vmatmul.mubr.bf16.gmra.mrb[56].mxu0 %v2285_v57  ;;  %vm2126_vm13 = vcmp.gt.f32.partialorder %v3459_v12, 0.0  ;;  %v3364_v14 = vcombine.high %v4576_v62, %v4576_v62  ;;  %s4090_s22 = scalar_lea.vmem %s3098_s5, 16  ;;  %s4094_s23 = scalar_lea.vmem %s3098_s5, 32 }
 0x24c   :  { %vm2129_vm14 = vcmp.gt.f32.partialorder %v3460_v11, 0.0  ;;  %v2193_v8 = vmul.f32 0.2, %v3460_v11  ;;  %v2253_v3 = vsel %vm2125_vm12, %v3458_v59, %v2189_v50  ;;  %p4091_p10 = scmp.ne.s32.totalorder %s3098_s5, %s4090_s22  ;;  %p4095_p11 = scmp.lt.s32.totalorder %s3098_s5, %s3098_s5 }
 0x24d   :  { %vm2130_vm15 = vcmp.gt.f32.partialorder %v3461_v60, 0.0  ;;  %v2194_v37 = vmul.f32 0.2, %v3461_v60  ;;  %v2254_v23 = vsel %vm2126_vm13, %v3459_v12, %v2190_v13  ;;  %3065 = vmatprep.mubr.bf16.mxu1 %v3364_v14  ;;  %p4096_p12 = scmp.lt.s32.totalorder %s4094_s23, %s4090_s22 }
 0x24e   :  { %v2257_v9 = vsel %vm2129_vm14, %v3460_v11, %v2193_v8 }
 0x24f   :  { %v2258_v24 = vsel %vm2130_vm15, %v3461_v60, %v2194_v37  ;;  %v2289_v34 = vpack.c.bf16 %v2257_v9, %v2253_v3  ;;  %p4097_p13 = por %p4096_p12, %p4095_p11 }
 0x250   :  { %v2290_v35 = vpack.c.bf16 %v2258_v24, %v2254_v23 }
 0x251   :  { %p4098_p0 = pnand %p4097_p13, %p4091_p10 }
 0x252   :  { %2902 = vmatprep.mubr.bf16.mxu0 %v2290_v35 }
 0x253   :  { %2903 = vmatmul.mubr.bf16.gmra.mrb[60].mxu0 %v2289_v34 }
 0x2ee   :  { %v2834_v19 = vpop.f32.mrb[32].mxu0 }
 0x2ef   :  { %v3462_v32 = vadd.f32 %v2834_v19, %v4584_v40  ;;  %v2836_v16 = vpop.f32.mrb[33].mxu0 }
 0x2f0   :  { %v3463_v27 = vadd.f32 %v2836_v16, %v4588_v43  ;;  %v2838_v38 = vpop.f32.mrb[34].mxu0 }
 0x2f1   :  { %v2945_v41 = vmul.f32 0.2, %v3462_v32  ;;  %v3464_v47 = vadd.f32 %v2838_v38, %v4584_v40  ;;  %v2840_v61 = vpop.f32.mrb[35].mxu0  ;;  %vm2913_vm0 = vcmp.gt.f32.partialorder %v3462_v32, 0.0 }
 0x2f2   :  { %v2946_v45 = vmul.f32 0.2, %v3463_v27  ;;  %v3465_v49 = vadd.f32 %v2840_v61, %v4588_v43  ;;  %vm2914_vm1 = vcmp.gt.f32.partialorder %v3463_v27, 0.0 }
 0x2f3   :  { %vm2915_vm2 = vcmp.gt.f32.partialorder %v3464_v47, 0.0  ;;  %v2947_v44 = vmul.f32 0.2, %v3464_v47  ;;  %v2977_v17 = vsel %vm2913_vm0, %v3462_v32, %v2945_v41 }
 0x2f4   :  { %vm2916_vm3 = vcmp.gt.f32.partialorder %v3465_v49, 0.0  ;;  %v2948_v21 = vmul.f32 0.2, %v3465_v49  ;;  %v2978_v22 = vsel %vm2914_vm1, %v3463_v27, %v2946_v45 }
 0x2f5   :  { %v2979_v26 = vsel %vm2915_vm2, %v3464_v47, %v2947_v44 }
 0x2f6   :  { %v3010_v7 = vpack.c.bf16 %v2979_v26, %v2977_v17  ;;  %v2844_v5 = vpop.f32.mrb[36].mxu0  ;;  %v2980_v1 = vsel %vm2916_vm3, %v3465_v49, %v2948_v21 }
 0x2f7   :  { %v3466_v28 = vadd.f32 %v2844_v5, %v4584_v40  ;;  %v2846_v2 = vpop.f32.mrb[37].mxu0  ;;  %v3011_v42 = vpack.c.bf16 %v2980_v1, %v2978_v22 }
 0x2f8   :  { %v3467_v51 = vadd.f32 %v2846_v2, %v4588_v43  ;;  %v2848_v31 = vpop.f32.mrb[38].mxu0 }
 0x2f9   :  { %v2949_v18 = vmul.f32 0.2, %v3466_v28  ;;  %v3468_v52 = vadd.f32 %v2848_v31, %v4584_v40  ;;  %v2850_v53 = vpop.f32.mrb[39].mxu0  ;;  %3033 = vmatprep.subr.bf16.mxu1 %v3011_v42  ;;  %vm2917_vm4 = vcmp.gt.f32.partialorder %v3466_v28, 0.0 }
 0x2fa   :  { %v2950_v25 = vmul.f32 0.2, %v3467_v51  ;;  %v3469_v56 = vadd.f32 %v2850_v53, %v4588_v43  ;;  %3034 = vmatpush1.bf16.xpose.msra.mxu1 %v3010_v7  ;;  %vm2918_vm5 = vcmp.gt.f32.partialorder %v3467_v51, 0.0 }
 0x2fb   :  { %vm2919_vm6 = vcmp.gt.f32.partialorder %v3468_v52, 0.0  ;;  %v2951_v46 = vmul.f32 0.2, %v3468_v52  ;;  %v2981_v58 = vsel %vm2917_vm4, %v3466_v28, %v2949_v18 }
 0x2fc   :  { %vm2920_vm7 = vcmp.gt.f32.partialorder %v3469_v56, 0.0  ;;  %v2952_v6 = vmul.f32 0.2, %v3469_v56  ;;  %v2982_v55 = vsel %vm2918_vm5, %v3467_v51, %v2950_v25 }
 0x2fd   :  { %v2983_v33 = vsel %vm2919_vm6, %v3468_v52, %v2951_v46 }
 0x2fe   :  { %v3012_v48 = vpack.c.bf16 %v2983_v33, %v2981_v58  ;;  %v2854_v63 = vpop.f32.mrb[40].mxu0  ;;  %v2984_v0 = vsel %vm2920_vm7, %v3469_v56, %v2952_v6 }
 0x2ff   :  { %v3470_v36 = vadd.f32 %v2854_v63, %v4584_v40  ;;  %v2856_v57 = vpop.f32.mrb[41].mxu0  ;;  %v3013_v59 = vpack.c.bf16 %v2984_v0, %v2982_v55 }
 0x300   :  { %v3471_v20 = vadd.f32 %v2856_v57, %v4588_v43  ;;  %v2858_v10 = vpop.f32.mrb[42].mxu0 }
 0x301   :  { %v2953_v12 = vmul.f32 0.2, %v3470_v36  ;;  %v3472_v4 = vadd.f32 %v2858_v10, %v4584_v40  ;;  %v2860_v50 = vpop.f32.mrb[43].mxu0  ;;  %3035 = vmatprep.subr.bf16.mxu1 %v3013_v59  ;;  %vm2921_vm8 = vcmp.gt.f32.partialorder %v3470_v36, 0.0 }
 0x302   :  { %v2954_v11 = vmul.f32 0.2, %v3471_v20  ;;  %v3473_v30 = vadd.f32 %v2860_v50, %v4588_v43  ;;  %3036 = vmatpush1.bf16.xpose.msra.mxu1 %v3012_v48  ;;  %vm2922_vm9 = vcmp.gt.f32.partialorder %v3471_v20, 0.0 }
 0x303   :  { %vm2923_vm10 = vcmp.gt.f32.partialorder %v3472_v4, 0.0  ;;  %v2955_v13 = vmul.f32 0.2, %v3472_v4  ;;  %v2985_v8 = vsel %vm2921_vm8, %v3470_v36, %v2953_v12 }
 0x304   :  { %vm2924_vm11 = vcmp.gt.f32.partialorder %v3473_v30, 0.0  ;;  %v2956_v60 = vmul.f32 0.2, %v3473_v30  ;;  %v2986_v23 = vsel %vm2922_vm9, %v3471_v20, %v2954_v11 }
 0x305   :  { %v2987_v37 = vsel %vm2923_vm10, %v3472_v4, %v2955_v13 }
 0x306   :  { %v3014_v3 = vpack.c.bf16 %v2987_v37, %v2985_v8  ;;  %v2864_v9 = vpop.f32.mrb[44].mxu0  ;;  %v2988_v24 = vsel %vm2924_vm11, %v3473_v30, %v2956_v60 }
 0x307   :  { %v3474_v34 = vadd.f32 %v2864_v9, %v4584_v40  ;;  %v2866_v35 = vpop.f32.mrb[45].mxu0  ;;  %v3015_v14 = vpack.c.bf16 %v2988_v24, %v2986_v23 }
 0x308   :  { %v3475_v29 = vadd.f32 %v2866_v35, %v4588_v43  ;;  %v2868_v15 = vpop.f32.mrb[46].mxu0 }
 0x309   :  { %v2957_v39 = vmul.f32 0.2, %v3474_v34  ;;  %v3476_v19 = vadd.f32 %v2868_v15, %v4584_v40  ;;  %v2870_v32 = vpop.f32.mrb[47].mxu0  ;;  %3037 = vmatprep.subr.bf16.mxu1 %v3015_v14  ;;  %vm2925_vm12 = vcmp.gt.f32.partialorder %v3474_v34, 0.0 }
 0x30a   :  { %v2958_v16 = vmul.f32 0.2, %v3475_v29  ;;  %v3477_v27 = vadd.f32 %v2870_v32, %v4588_v43  ;;  %3038 = vmatpush1.bf16.xpose.msra.mxu1 %v3014_v3  ;;  %vm2926_vm13 = vcmp.gt.f32.partialorder %v3475_v29, 0.0 }
 0x30b   :  { %vm2927_vm14 = vcmp.gt.f32.partialorder %v3476_v19, 0.0  ;;  %v2959_v38 = vmul.f32 0.2, %v3476_v19  ;;  %v2989_v47 = vsel %vm2925_vm12, %v3474_v34, %v2957_v39 }
 0x30c   :  { %vm2928_vm15 = vcmp.gt.f32.partialorder %v3477_v27, 0.0  ;;  %v2960_v41 = vmul.f32 0.2, %v3477_v27  ;;  %v2990_v44 = vsel %vm2926_vm13, %v3475_v29, %v2958_v16 }
 0x30d   :  { %v2991_v61 = vsel %vm2927_vm14, %v3476_v19, %v2959_v38 }
 0x30e   :  { %v3016_v45 = vpack.c.bf16 %v2991_v61, %v2989_v47  ;;  %v2874_v49 = vpop.f32.mrb[48].mxu0  ;;  %v2992_v21 = vsel %vm2928_vm15, %v3477_v27, %v2960_v41 }
 0x30f   :  { %v3478_v17 = vadd.f32 %v2874_v49, %v4584_v40  ;;  %v2876_v26 = vpop.f32.mrb[49].mxu0  ;;  %v3017_v7 = vpack.c.bf16 %v2992_v21, %v2990_v44 }
 0x310   :  { %v3479_v5 = vadd.f32 %v2876_v26, %v4588_v43  ;;  %v2878_v22 = vpop.f32.mrb[50].mxu0 }
 0x311   :  { %v2961_v1 = vmul.f32 0.2, %v3478_v17  ;;  %v3480_v28 = vadd.f32 %v2878_v22, %v4584_v40  ;;  %v2880_v2 = vpop.f32.mrb[51].mxu0  ;;  %3039 = vmatprep.subr.bf16.mxu1 %v3017_v7  ;;  %vm2929_vm0 = vcmp.gt.f32.partialorder %v3478_v17, 0.0 }
 0x312   :  { %v2962_v42 = vmul.f32 0.2, %v3479_v5  ;;  %v3481_v51 = vadd.f32 %v2880_v2, %v4588_v43  ;;  %3040 = vmatpush1.bf16.xpose.msra.mxu1 %v3016_v45  ;;  %vm2930_vm1 = vcmp.gt.f32.partialorder %v3479_v5, 0.0 }
 0x313   :  { %vm2931_vm2 = vcmp.gt.f32.partialorder %v3480_v28, 0.0  ;;  %v2963_v31 = vmul.f32 0.2, %v3480_v28  ;;  %v2993_v52 = vsel %vm2929_vm0, %v3478_v17, %v2961_v1 }
 0x314   :  { %vm2932_vm3 = vcmp.gt.f32.partialorder %v3481_v51, 0.0  ;;  %v2964_v18 = vmul.f32 0.2, %v3481_v51  ;;  %v2994_v46 = vsel %vm2930_vm1, %v3479_v5, %v2962_v42 }
 0x315   :  { %v2995_v53 = vsel %vm2931_vm2, %v3480_v28, %v2963_v31 }
 0x316   :  { %v3018_v25 = vpack.c.bf16 %v2995_v53, %v2993_v52  ;;  %v2884_v56 = vpop.f32.mrb[52].mxu0  ;;  %v2996_v6 = vsel %vm2932_vm3, %v3481_v51, %v2964_v18  ;;  %v3077_v52 = vpop.permute.xlu0 %3076 }
 0x317   :  { %v3482_v58 = vadd.f32 %v2884_v56, %v4584_v40  ;;  %v2886_v33 = vpop.f32.mrb[53].mxu0  ;;  %v3019_v48 = vpack.c.bf16 %v2996_v6, %v2994_v46 }
 0x318   :  { %v3483_v63 = vadd.f32 %v2886_v33, %v4588_v43  ;;  %v2888_v55 = vpop.f32.mrb[54].mxu0 }
 0x319   :  { %v2965_v0 = vmul.f32 0.2, %v3482_v58  ;;  %v3484_v36 = vadd.f32 %v2888_v55, %v4584_v40  ;;  %v2890_v57 = vpop.f32.mrb[55].mxu0  ;;  %3041 = vmatprep.subr.bf16.mxu1 %v3019_v48  ;;  %vm2933_vm4 = vcmp.gt.f32.partialorder %v3482_v58, 0.0 }
 0x31a   :  { %v2966_v59 = vmul.f32 0.2, %v3483_v63  ;;  %v3485_v20 = vadd.f32 %v2890_v57, %v4588_v43  ;;  %3042 = vmatpush1.bf16.xpose.msra.mxu1 %v3018_v25  ;;  %vm2934_vm5 = vcmp.gt.f32.partialorder %v3483_v63, 0.0 }
 0x31b   :  { %vm2935_vm6 = vcmp.gt.f32.partialorder %v3484_v36, 0.0  ;;  %v2967_v10 = vmul.f32 0.2, %v3484_v36  ;;  %v2997_v4 = vsel %vm2933_vm4, %v3482_v58, %v2965_v0 }
 0x31c   :  { %vm2936_vm7 = vcmp.gt.f32.partialorder %v3485_v20, 0.0  ;;  %v2968_v12 = vmul.f32 0.2, %v3485_v20  ;;  %v2998_v13 = vsel %vm2934_vm5, %v3483_v63, %v2966_v59 }
 0x31d   :  { %v2999_v50 = vsel %vm2935_vm6, %v3484_v36, %v2967_v10 }
 0x31e   :  { %v3020_v11 = vpack.c.bf16 %v2999_v50, %v2997_v4  ;;  %v2894_v30 = vpop.f32.mrb[56].mxu0  ;;  %v3000_v60 = vsel %vm2936_vm7, %v3485_v20, %v2968_v12 }
 0x31f   :  { %v3486_v8 = vadd.f32 %v2894_v30, %v4584_v40  ;;  %v2896_v37 = vpop.f32.mrb[57].mxu0  ;;  %v3021_v3 = vpack.c.bf16 %v3000_v60, %v2998_v13 }
 0x320   :  { %v3487_v9 = vadd.f32 %v2896_v37, %v4588_v43  ;;  %v2898_v23 = vpop.f32.mrb[58].mxu0 }
 0x321   :  { %v2969_v24 = vmul.f32 0.2, %v3486_v8  ;;  %v3488_v34 = vadd.f32 %v2898_v23, %v4584_v40  ;;  %v2900_v35 = vpop.f32.mrb[59].mxu0  ;;  %3043 = vmatprep.subr.bf16.mxu1 %v3021_v3  ;;  %vm2937_vm8 = vcmp.gt.f32.partialorder %v3486_v8, 0.0 }
 0x322   :  { %v2970_v14 = vmul.f32 0.2, %v3487_v9  ;;  %v3489_v29 = vadd.f32 %v2900_v35, %v4588_v43  ;;  %3044 = vmatpush1.bf16.xpose.msra.mxu1 %v3020_v11  ;;  %vm2938_vm9 = vcmp.gt.f32.partialorder %v3487_v9, 0.0 }
 0x323   :  { %vm2939_vm10 = vcmp.gt.f32.partialorder %v3488_v34, 0.0  ;;  %v2971_v15 = vmul.f32 0.2, %v3488_v34  ;;  %v3001_v19 = vsel %vm2937_vm8, %v3486_v8, %v2969_v24 }
 0x324   :  { %vm2940_vm11 = vcmp.gt.f32.partialorder %v3489_v29, 0.0  ;;  %v2972_v39 = vmul.f32 0.2, %v3489_v29  ;;  %v3002_v38 = vsel %vm2938_vm9, %v3487_v9, %v2970_v14 }
 0x325   :  { %v3003_v32 = vsel %vm2939_vm10, %v3488_v34, %v2971_v15 }
 0x326   :  { %v3022_v16 = vpack.c.bf16 %v3003_v32, %v3001_v19  ;;  %v2904_v27 = vpop.f32.mrb[60].mxu0  ;;  %v3004_v41 = vsel %vm2940_vm11, %v3489_v29, %v2972_v39 }
 0x327   :  { %v3490_v47 = vadd.f32 %v2904_v27, %v4584_v40  ;;  %v2906_v61 = vpop.f32.mrb[61].mxu0  ;;  %v3023_v45 = vpack.c.bf16 %v3004_v41, %v3002_v38 }
 0x328   :  { %v3491_v49 = vadd.f32 %v2906_v61, %v4588_v43  ;;  %v2908_v44 = vpop.f32.mrb[62].mxu0 }
 0x329   :  { %v2973_v21 = vmul.f32 0.2, %v3490_v47  ;;  %v3492_v17 = vadd.f32 %v2908_v44, %v4584_v40  ;;  %v2910_v26 = vpop.f32.mrb[63].mxu0  ;;  %3045 = vmatprep.subr.bf16.mxu1 %v3023_v45  ;;  %vm2941_vm12 = vcmp.gt.f32.partialorder %v3490_v47, 0.0  ;;  %v3363_v40 = vcombine.low %v4576_v62, %v4576_v62 }
 0x32a   :  { %v2974_v7 = vmul.f32 0.2, %v3491_v49  ;;  %v3493_v5 = vadd.f32 %v2910_v26, %v4588_v43  ;;  %3046 = vmatpush1.bf16.xpose.msra.mxu1 %v3022_v16  ;;  %vm2942_vm13 = vcmp.gt.f32.partialorder %v3491_v49, 0.0  ;;  %v3082_v43 = vrot.slane %v3077_v52, %v4449_v54 }
 0x32b   :  { %vm2943_vm14 = vcmp.gt.f32.partialorder %v3492_v17, 0.0  ;;  %v2975_v22 = vmul.f32 0.2, %v3492_v17  ;;  %v3005_v28 = vsel %vm2941_vm12, %v3490_v47, %v2973_v21 }
 0x32c   :  { %vm2944_vm15 = vcmp.gt.f32.partialorder %v3493_v5, 0.0  ;;  %v2976_v1 = vmul.f32 0.2, %v3493_v5  ;;  %v3006_v51 = vsel %vm2942_vm13, %v3491_v49, %v2974_v7 }
 0x32d   :  { %v3007_v2 = vsel %vm2943_vm14, %v3492_v17, %v2975_v22 }
 0x32e   :  { %v3024_v42 = vpack.c.bf16 %v3007_v2, %v3005_v28  ;;  %v3008_v31 = vsel %vm2944_vm15, %v3493_v5, %v2976_v1 }
 0x32f   :  { %v3025_v18 = vpack.c.bf16 %v3008_v31, %v3006_v51 }
 0x331   :  { %3047 = vmatprep.subr.bf16.mxu1 %v3025_v18 }
 0x332   :  { %3048 = vmatpush1.bf16.xpose.msra.mxu1 %v3024_v42 }
 0x339   :  { %3066 = vmatmul.mubr.bf16.vlgmr.msra.gmra.mrb[64].mxu1 %v3363_v40 }
 0x40c   :  { %v3067_v53 = vpop.f32.mrb[64].mxu1 }
 0x40d   :  { %v3083_v25 = vadd.f32 %v3082_v43, %v3067_v53  ;;  %v3069_v56 = vpop.f32.mrb[65].mxu1 }
 0x40e   :  { %v3070_v46 = vpop.f32.mrb[66].mxu1 }
 0x40f   :  { %v3365_v6 = vmul.f32 -1.442695, %v3083_v25  ;;  %v3071_v58 = vpop.f32.mrb[67].mxu1 }
 0x411   :  { %4020 = vpow2.f32 %v3365_v6 }
 0x41b   :  { %v4021_v33 = vpop.eup %4020 }
 0x41c   :  { %v3087_v48 = vadd.f32 1.0, %v4021_v33 }
 0x41e   :  { %4022 = vrcp.f32 %v3087_v48 }
 0x428   :  { %v4023_v63 = vpop.eup %4022 }
 0x429   :  { %3090 = vst [vmem:[#allocation9] sm:$0x1] %v4023_v63 }
 0x42a   :  { %4101 = shalt.err (!%p4098_p0)
}
 0x42b   :  { %s4102_s1 = scalar_lea.hbm %s4644_s7, 16 }
 0x42c   :  { %p4103_p1 = scmp.ne.s32.totalorder %s4644_s7, %s4102_s1  ;;  %p4106_p2 = scmp.lt.u32.totalorder %s4102_s1, %s4644_s7 }
 0x42e   :  { %p4108_p3 = pnand %p4106_p2, %p4103_p1 }
 0x430   :  { %4111 = shalt.err (!%p4108_p3)
}
 0x431   :  { %3100 = dma.vmem_to_hbm [thread:$0]  %s3098_s5, 16, %s4644_s7, [#allocation5]  }
 0x432   :  { %4116 = dma.done.wait [#allocation5], 16  }
 0x433   :  { %4117 = vsyncadd [#allocation5], 4294967280 }
 0x434   :  { %3104 = vsyncpa [#allocation4], 1 }
 0x435   :  { %3105 = vsyncpa [#allocation7], 1 }
 0x436   :  { %3106 = vsyncpa [#allocation5], 1 }

</bundles_post_ra>
